<compile_context>
chip_gen: v7x
topology: tpu7x:2x2x1
jax: 0.10.0
libtpu: 0.0.40
codegen_flags: <defaults>
</compile_context>

<pallas_src>
import functools

import numpy as np
import jax
import jax.numpy as jnp
from jax.experimental import pallas as pl
from jax.experimental.pallas import tpu as pltpu


# ----------------------------- Pallas kernel --------------------------------


def _yolo_loss_kernel(pred_ref, tbox_ref, tcls_ref, obj_ref, out_ref, *, inv_S):
    """Per-tile partial YOLO loss sums (lane-dense layout).

    pred_ref : (30, TMb, 128)  [x1 y1 w1 h1 c1 | x2 y2 w2 h2 c2 | 20 class]
    tbox_ref : (4,  TMb, 128)  target x y w h
    tcls_ref : (20, TMb, 128)  target class
    obj_ref  : (1,  TMb, 128)  has_object (1.0 / 0.0); padded cells are 0
    out_ref  : (4, 128) f32    per-tile lane partials [cls, noobj, reg, conf]
                               (lane + tile reduction finished in the wrapper)
    """
    pred = pred_ref[...].astype(jnp.float32)          # (30, TMb, 128)
    tbox = tbox_ref[...].astype(jnp.float32)          # (4,  TMb, 128)
    tcls = tcls_ref[...].astype(jnp.float32)          # (20, TMb, 128)
    obj = obj_ref[0].astype(jnp.float32)              # (TMb, 128)

    objb = obj > 0.5
    noobj = 1.0 - obj

    # ---- class prediction loss (object cells only) ----
    dcls = pred[10:30] - tcls                         # (20, TMb, 128)
    cls_cell = jnp.sum(dcls * dcls, axis=0)           # leading-dim reduce: VPU only

    # ---- no-object loss: conf^2 of both boxes on non-object cells ----
    conf1 = pred[4]
    conf2 = pred[9]
    noobj_cell = noobj * (conf1 * conf1 + conf2 * conf2)

    # ---- best-IoU box selection (meaningful on object cells only) ----
    def to_xyxy(x, y, w, h):
        cx = x * inv_S
        cy = y * inv_S
        hw = 0.5 * w
        hh = 0.5 * h
        return cx - hw, cy - hh, cx + hw, cy + hh

    def iou(a, b):
        ax1, ay1, ax2, ay2 = a
        bx1, by1, bx2, by2 = b
        iw = jnp.maximum(jnp.minimum(ax2, bx2) - jnp.maximum(ax1, bx1), 0.0)
        ih = jnp.maximum(jnp.minimum(ay2, by2) - jnp.maximum(ay1, by1), 0.0)
        inter = iw * ih
        a1 = (ax2 - ax1) * (ay2 - ay1)
        a2 = (bx2 - bx1) * (by2 - by1)
        # guard division on padded / non-object cells (their loss term is zeroed)
        denom = jnp.where(objb, a1 + a2 - inter, 1.0)
        return inter / denom                          # exact divide (accuracy)

    t_xyxy = to_xyxy(tbox[0], tbox[1], tbox[2], tbox[3])
    iou1 = iou(to_xyxy(pred[0], pred[1], pred[2], pred[3]), t_xyxy)
    iou2 = iou(to_xyxy(pred[5], pred[6], pred[7], pred[8]), t_xyxy)

    # ties -> box 2, matching the reference `if iou1 > iou2: box1 else box2`
    take1 = iou1 > iou2
    best_iou = jnp.where(take1, iou1, iou2)
    bx = jnp.where(take1, pred[0], pred[5])
    by = jnp.where(take1, pred[1], pred[6])
    bw = jnp.where(take1, pred[2], pred[7])
    bh = jnp.where(take1, pred[3], pred[8])
    bc = jnp.where(take1, pred[4], pred[9])

    # ---- regression loss (xy + sqrt(wh)) on object cells ----
    dx = bx - tbox[0]
    dy = by - tbox[1]
    # mask before sqrt so padded / non-object cells cannot produce NaN
    dw = jnp.sqrt(jnp.where(objb, bw, 1.0)) - jnp.sqrt(jnp.where(objb, tbox[2], 1.0))
    dh = jnp.sqrt(jnp.where(objb, bh, 1.0)) - jnp.sqrt(jnp.where(objb, tbox[3], 1.0))
    reg_cell = dx * dx + dy * dy + dw * dw + dh * dh

    # ---- containing-object confidence loss (target = best IoU, detached) ----
    dconf = bc - best_iou
    conf_cell = dconf * dconf

    # ---- per-tile partials: reduce sublanes, keep a lane-dense (4,128) block ----
    out_ref[0:1, :] = jnp.sum(obj * cls_cell, axis=0, keepdims=True)
    out_ref[1:2, :] = jnp.sum(noobj_cell, axis=0, keepdims=True)
    out_ref[2:3, :] = jnp.sum(obj * reg_cell, axis=0, keepdims=True)
    out_ref[3:4, :] = jnp.sum(obj * conf_cell, axis=0, keepdims=True)


# ------------------------------- wrapper -------------------------------------


def _round_up(x, m):
    return ((x + m - 1) // m) * m


def _io_dtype(x):
    # only keep bf16 if the tensor is already bf16; never quantize f32 targets
    return jnp.bfloat16 if x.dtype == jnp.bfloat16 else jnp.float32


def yolo_loss(pred_tensor, target_boxes, target_cls, has_object_map,
              *, S, B=2, l_coord=5.0, l_noobj=0.5, cell_tile=None):
    """JAX/Pallas equivalent of YoloLoss.forward. Returns the same loss dict."""
    assert B == 2, "channel layout (B*5 + 20 = 30) assumes B == 2"
    N = pred_tensor.shape[0]
    M = N * S * S

    # Tile selection: TMb sublane-rows of 128 cells each.
    #   single grid step for up to 16384 cells (~7 MiB double-buffered f32:
    #   safe under every chip's default scoped VMEM); 8192-cell tiles beyond,
    #   with a "parallel" grid so v7x can split tiles across its 2 TCs.
    mb_needed = pl.cdiv(M, 128)
    if cell_tile is None:
        tmb = mb_needed if mb_needed <= 128 else 64
    else:
        tmb = pl.cdiv(int(cell_tile), 128)
    TMb = max(16, _round_up(tmb, 16))      # 16-sublane aligned (bf16-safe)
    Mb = _round_up(max(mb_needed, 1), TMb)
    Mp = Mb * 128
    G = Mb // TMb

    def prep(x, C):
        x = x.reshape(M, C).astype(_io_dtype(x))
        x = jnp.pad(x, ((0, Mp - M), (0, 0)))          # padded cells: all zeros
        return x.T.reshape(C, Mb, 128)                  # channel-major, cells on lanes

    pred_t = prep(pred_tensor, 5 * B + 20)              # (30, Mb, 128)
    tbox_t = prep(target_boxes, 4)                      # (4,  Mb, 128)
    tcls_t = prep(target_cls, 20)                       # (20, Mb, 128)
    obj_t = prep(has_object_map.astype(jnp.float32), 1)  # (1, Mb, 128)

    partials = pl.pallas_call(
        functools.partial(_yolo_loss_kernel, inv_S=1.0 / float(S)),
        out_shape=jax.ShapeDtypeStruct((G, 4, 128), jnp.float32),
        grid=(G,),
        in_specs=[
            pl.BlockSpec((30, TMb, 128), lambda i: (0, i, 0)),
            pl.BlockSpec((4, TMb, 128), lambda i: (0, i, 0)),
            pl.BlockSpec((20, TMb, 128), lambda i: (0, i, 0)),
            pl.BlockSpec((1, TMb, 128), lambda i: (0, i, 0)),
        ],
        out_specs=pl.BlockSpec((None, 4, 128), lambda i: (i, 0, 0)),
        compiler_params=pltpu.CompilerParams(
            dimension_semantics=("parallel",)),          # no carried state
    )(pred_t, tbox_t, tcls_t, obj_t)

    # tiny finish in XLA: (G, 4, 128) -> 4 scalars
    sums = jnp.sum(partials, axis=(0, 2))
    cls_loss = sums[0] / N
    no_obj_loss = sums[1] / N
    reg_loss = sums[2] / N
    contain_loss = sums[3] / N
    total = (l_coord * reg_loss + contain_loss +
             l_noobj * no_obj_loss + cls_loss)
    return dict(total_loss=total, reg_loss=reg_loss,
                containing_obj_loss=contain_loss,
                no_obj_loss=no_obj_loss, cls_loss=cls_loss)


# --------------------------- pure-JAX reference ------------------------------


def ref_yolo_loss(pred, tbox, tcls, obj, *, S, l_coord, l_noobj):
    N = pred.shape[0]
    objf = obj.astype(jnp.float32)[..., None]        # (N,S,S,1)
    pred1 = pred[..., 0:5]
    pred2 = pred[..., 5:10]
    pcls = pred[..., 10:]

    cls_loss = jnp.sum(objf * (pcls - tcls) ** 2) / N
    no_obj_loss = jnp.sum((1.0 - objf[..., 0]) *
                          (pred[..., 4] ** 2 + pred[..., 9] ** 2)) / N

    def to_xyxy(b):
        x, y, w, h = b[..., 0], b[..., 1], b[..., 2], b[..., 3]
        return jnp.stack([x / S - 0.5 * w, y / S - 0.5 * h,
                          x / S + 0.5 * w, y / S + 0.5 * h], axis=-1)

    def iou(a, b):
        lt = jnp.maximum(a[..., :2], b[..., :2])
        rb = jnp.minimum(a[..., 2:], b[..., 2:])
        wh = jnp.maximum(rb - lt, 0.0)
        inter = wh[..., 0] * wh[..., 1]
        a1 = (a[..., 2] - a[..., 0]) * (a[..., 3] - a[..., 1])
        a2 = (b[..., 2] - b[..., 0]) * (b[..., 3] - b[..., 1])
        denom = a1 + a2 - inter
        denom = jnp.where(obj, denom, 1.0)
        return inter / denom

    tx = to_xyxy(tbox)
    iou1 = iou(to_xyxy(pred1[..., :4]), tx)
    iou2 = iou(to_xyxy(pred2[..., :4]), tx)
    take1 = iou1 > iou2
    best_iou = jnp.where(take1, iou1, iou2)
    best_box = jnp.where(take1[..., None], pred1, pred2)

    mask = objf[..., 0]
    best_wh = jnp.where(objf > 0, best_box[..., 2:4], 1.0)
    t_wh = jnp.where(objf > 0, tbox[..., 2:4], 1.0)
    reg_loss = (jnp.sum(mask[..., None] *
                        (best_box[..., 0:2] - tbox[..., 0:2]) ** 2) +
                jnp.sum(mask[..., None] *
                        (jnp.sqrt(best_wh) - jnp.sqrt(t_wh)) ** 2)) / N
    contain_loss = jnp.sum(mask * (best_box[..., 4] - best_iou) ** 2) / N
    total = (l_coord * reg_loss + contain_loss +
             l_noobj * no_obj_loss + cls_loss)
    return dict(total_loss=total, reg_loss=reg_loss,
                containing_obj_loss=contain_loss,
                no_obj_loss=no_obj_loss, cls_loss=cls_loss)


# ----------------------------------- main -------------------------------------


if __name__ == "__main__":
    # Hyperparameters of YoloLoss(S, B, l_coord, l_noobj)
    S, B = 7, 2
    l_coord, l_noobj = 5.0, 0.5
    N = 2

    key = jax.random.PRNGKey(0)
    k1, k2, k3, k4, k5 = jax.random.split(key, 5)

    # pred in (0,1): keeps w,h positive so sqrt matches the reference semantics
    pred_tensor = jax.random.uniform(k1, (N, S, S, 5 * B + 20),
                                     minval=0.05, maxval=0.95,
                                     dtype=jnp.float32)
    txy = jax.random.uniform(k2, (N, S, S, 2), minval=0.1, maxval=0.9,
                             dtype=jnp.float32)
    twh = jax.random.uniform(k3, (N, S, S, 2), minval=0.1, maxval=0.9,
                             dtype=jnp.float32)
    target_boxes = jnp.concatenate([txy, twh], axis=-1)
    target_cls = jax.random.uniform(k4, (N, S, S, 20), dtype=jnp.float32)
    has_object_map = jax.random.bernoulli(k5, p=0.3, shape=(N, S, S))

    out = yolo_loss(pred_tensor, target_boxes, target_cls, has_object_map,
                    S=S, B=B, l_coord=l_coord, l_noobj=l_noobj)
    out = jax.tree_util.tree_map(jax.block_until_ready, out)

    ref = ref_yolo_loss(pred_tensor, target_boxes, target_cls, has_object_map,
                        S=S, l_coord=l_coord, l_noobj=l_noobj)

    for k in ("total_loss", "reg_loss", "containing_obj_loss",
              "no_obj_loss", "cls_loss"):
        np.testing.assert_allclose(np.asarray(out[k]), np.asarray(ref[k]),
                                   rtol=1e-4, atol=1e-4)

    print("KERNEL_OK")
</pallas_src>

<mosaic_0001>
module attributes {stable_mosaic.version = 11 : i64} {
  func.func @_yolo_loss_kernel(%arg0: i32, %arg1: memref<30x16x128xf32, #tpu.memory_space<vmem>>, %arg2: memref<4x16x128xf32, #tpu.memory_space<vmem>>, %arg3: memref<20x16x128xf32, #tpu.memory_space<vmem>>, %arg4: memref<1x16x128xf32, #tpu.memory_space<vmem>>, %arg5: memref<1x4x128xf32, #tpu.memory_space<vmem>>) attributes {dimension_semantics = [#tpu.dimension_semantics<parallel>], iteration_bounds = array<i64: 1>, scalar_prefetch = 0 : i64, scratch_operands = 0 : i64, tpu.core_type = #tpu.core_type<tc>, window_params = [{transform_indices = @transform_0, window_bounds = array<i64: 30, 16, 128>}, {transform_indices = @transform_1, window_bounds = array<i64: 4, 16, 128>}, {transform_indices = @transform_2, window_bounds = array<i64: 20, 16, 128>}, {transform_indices = @transform_3, window_bounds = array<i64: 1, 16, 128>}, {transform_indices = @transform_4, window_bounds = array<i64: 1, 4, 128>}]} {
    %c0 = arith.constant 0 : index
    %c0_0 = arith.constant 0 : index
    %c0_1 = arith.constant 0 : index
    %0 = vector.load %arg1[%c0, %c0_0, %c0_1] : memref<30x16x128xf32, #tpu.memory_space<vmem>>, vector<30x16x128xf32>
    %c0_2 = arith.constant 0 : index
    %c0_3 = arith.constant 0 : index
    %c0_4 = arith.constant 0 : index
    %1 = vector.load %arg2[%c0_2, %c0_3, %c0_4] : memref<4x16x128xf32, #tpu.memory_space<vmem>>, vector<4x16x128xf32>
    %c0_5 = arith.constant 0 : index
    %c0_6 = arith.constant 0 : index
    %c0_7 = arith.constant 0 : index
    %2 = vector.load %arg3[%c0_5, %c0_6, %c0_7] : memref<20x16x128xf32, #tpu.memory_space<vmem>>, vector<20x16x128xf32>
    %c0_8 = arith.constant 0 : index
    %c0_9 = arith.constant 0 : index
    %c0_10 = arith.constant 0 : index
    %3 = vector.load %arg4[%c0_8, %c0_9, %c0_10] : memref<1x16x128xf32, #tpu.memory_space<vmem>>, vector<1x16x128xf32>
    %4 = vector.shape_cast %3 : vector<1x16x128xf32> to vector<16x128xf32>
    %cst = arith.constant 5.000000e-01 : f32
    %5 = vector.broadcast %cst : f32 to vector<16x128xf32>
    %6 = arith.cmpf ogt, %4, %5 : vector<16x128xf32>
    %cst_11 = arith.constant 1.000000e+00 : f32
    %7 = vector.broadcast %cst_11 : f32 to vector<16x128xf32>
    %8 = arith.subf %7, %4 : vector<16x128xf32>
    %9 = vector.extract_strided_slice %0 {offsets = [10, 0, 0], sizes = [20, 16, 128], strides = [1, 1, 1]} : vector<30x16x128xf32> to vector<20x16x128xf32>
    %10 = arith.subf %9, %2 : vector<20x16x128xf32>
    %11 = arith.mulf %10, %10 : vector<20x16x128xf32>
    %cst_12 = arith.constant dense<0.000000e+00> : vector<16x128xf32>
    %12 = vector.multi_reduction <add>, %11, %cst_12 [0] : vector<20x16x128xf32> to vector<16x128xf32>
    %13 = vector.extract_strided_slice %0 {offsets = [4, 0, 0], sizes = [1, 16, 128], strides = [1, 1, 1]} : vector<30x16x128xf32> to vector<1x16x128xf32>
    %14 = vector.shape_cast %13 : vector<1x16x128xf32> to vector<16x128xf32>
    %15 = vector.extract_strided_slice %0 {offsets = [9, 0, 0], sizes = [1, 16, 128], strides = [1, 1, 1]} : vector<30x16x128xf32> to vector<1x16x128xf32>
    %16 = vector.shape_cast %15 : vector<1x16x128xf32> to vector<16x128xf32>
    %17 = arith.mulf %14, %14 : vector<16x128xf32>
    %18 = arith.mulf %16, %16 : vector<16x128xf32>
    %19 = arith.addf %17, %18 : vector<16x128xf32>
    %20 = arith.mulf %8, %19 : vector<16x128xf32>
    %21 = vector.extract_strided_slice %1 {offsets = [0, 0, 0], sizes = [1, 16, 128], strides = [1, 1, 1]} : vector<4x16x128xf32> to vector<1x16x128xf32>
    %22 = vector.shape_cast %21 : vector<1x16x128xf32> to vector<16x128xf32>
    %23 = vector.extract_strided_slice %1 {offsets = [1, 0, 0], sizes = [1, 16, 128], strides = [1, 1, 1]} : vector<4x16x128xf32> to vector<1x16x128xf32>
    %24 = vector.shape_cast %23 : vector<1x16x128xf32> to vector<16x128xf32>
    %25 = vector.extract_strided_slice %1 {offsets = [2, 0, 0], sizes = [1, 16, 128], strides = [1, 1, 1]} : vector<4x16x128xf32> to vector<1x16x128xf32>
    %26 = vector.shape_cast %25 : vector<1x16x128xf32> to vector<16x128xf32>
    %27 = vector.extract_strided_slice %1 {offsets = [3, 0, 0], sizes = [1, 16, 128], strides = [1, 1, 1]} : vector<4x16x128xf32> to vector<1x16x128xf32>
    %28 = vector.shape_cast %27 : vector<1x16x128xf32> to vector<16x128xf32>
    %cst_13 = arith.constant 0.142857149 : f32
    %29 = vector.broadcast %cst_13 : f32 to vector<16x128xf32>
    %30 = arith.mulf %22, %29 : vector<16x128xf32>
    %cst_14 = arith.constant 0.142857149 : f32
    %31 = vector.broadcast %cst_14 : f32 to vector<16x128xf32>
    %32 = arith.mulf %24, %31 : vector<16x128xf32>
    %cst_15 = arith.constant 5.000000e-01 : f32
    %33 = vector.broadcast %cst_15 : f32 to vector<16x128xf32>
    %34 = arith.mulf %33, %26 : vector<16x128xf32>
    %cst_16 = arith.constant 5.000000e-01 : f32
    %35 = vector.broadcast %cst_16 : f32 to vector<16x128xf32>
    %36 = arith.mulf %35, %28 : vector<16x128xf32>
    %37 = arith.subf %30, %34 : vector<16x128xf32>
    %38 = arith.subf %32, %36 : vector<16x128xf32>
    %39 = arith.addf %30, %34 : vector<16x128xf32>
    %40 = arith.addf %32, %36 : vector<16x128xf32>
    %41 = vector.extract_strided_slice %0 {offsets = [0, 0, 0], sizes = [1, 16, 128], strides = [1, 1, 1]} : vector<30x16x128xf32> to vector<1x16x128xf32>
    %42 = vector.shape_cast %41 : vector<1x16x128xf32> to vector<16x128xf32>
    %43 = vector.extract_strided_slice %0 {offsets = [1, 0, 0], sizes = [1, 16, 128], strides = [1, 1, 1]} : vector<30x16x128xf32> to vector<1x16x128xf32>
    %44 = vector.shape_cast %43 : vector<1x16x128xf32> to vector<16x128xf32>
    %45 = vector.extract_strided_slice %0 {offsets = [2, 0, 0], sizes = [1, 16, 128], strides = [1, 1, 1]} : vector<30x16x128xf32> to vector<1x16x128xf32>
    %46 = vector.shape_cast %45 : vector<1x16x128xf32> to vector<16x128xf32>
    %47 = vector.extract_strided_slice %0 {offsets = [3, 0, 0], sizes = [1, 16, 128], strides = [1, 1, 1]} : vector<30x16x128xf32> to vector<1x16x128xf32>
    %48 = vector.shape_cast %47 : vector<1x16x128xf32> to vector<16x128xf32>
    %cst_17 = arith.constant 0.142857149 : f32
    %49 = vector.broadcast %cst_17 : f32 to vector<16x128xf32>
    %50 = arith.mulf %42, %49 : vector<16x128xf32>
    %cst_18 = arith.constant 0.142857149 : f32
    %51 = vector.broadcast %cst_18 : f32 to vector<16x128xf32>
    %52 = arith.mulf %44, %51 : vector<16x128xf32>
    %cst_19 = arith.constant 5.000000e-01 : f32
    %53 = vector.broadcast %cst_19 : f32 to vector<16x128xf32>
    %54 = arith.mulf %53, %46 : vector<16x128xf32>
    %cst_20 = arith.constant 5.000000e-01 : f32
    %55 = vector.broadcast %cst_20 : f32 to vector<16x128xf32>
    %56 = arith.mulf %55, %48 : vector<16x128xf32>
    %57 = arith.subf %50, %54 : vector<16x128xf32>
    %58 = arith.subf %52, %56 : vector<16x128xf32>
    %59 = arith.addf %50, %54 : vector<16x128xf32>
    %60 = arith.addf %52, %56 : vector<16x128xf32>
    %61 = arith.minimumf %59, %39 : vector<16x128xf32>
    %62 = arith.maximumf %57, %37 : vector<16x128xf32>
    %63 = arith.subf %61, %62 : vector<16x128xf32>
    %cst_21 = arith.constant 0.000000e+00 : f32
    %64 = vector.broadcast %cst_21 : f32 to vector<16x128xf32>
    %65 = arith.maximumf %63, %64 : vector<16x128xf32>
    %66 = arith.minimumf %60, %40 : vector<16x128xf32>
    %67 = arith.maximumf %58, %38 : vector<16x128xf32>
    %68 = arith.subf %66, %67 : vector<16x128xf32>
    %cst_22 = arith.constant 0.000000e+00 : f32
    %69 = vector.broadcast %cst_22 : f32 to vector<16x128xf32>
    %70 = arith.maximumf %68, %69 : vector<16x128xf32>
    %71 = arith.mulf %65, %70 : vector<16x128xf32>
    %72 = arith.subf %59, %57 : vector<16x128xf32>
    %73 = arith.subf %60, %58 : vector<16x128xf32>
    %74 = arith.mulf %72, %73 : vector<16x128xf32>
    %75 = arith.subf %39, %37 : vector<16x128xf32>
    %76 = arith.subf %40, %38 : vector<16x128xf32>
    %77 = arith.mulf %75, %76 : vector<16x128xf32>
    %78 = arith.addf %74, %77 : vector<16x128xf32>
    %79 = arith.subf %78, %71 : vector<16x128xf32>
    %cst_23 = arith.constant 1.000000e+00 : f32
    %80 = vector.broadcast %cst_23 : f32 to vector<16x128xf32>
    %81 = arith.select %6, %79, %80 : vector<16x128xi1>, vector<16x128xf32>
    %82 = arith.divf %71, %81 : vector<16x128xf32>
    %83 = vector.extract_strided_slice %0 {offsets = [5, 0, 0], sizes = [1, 16, 128], strides = [1, 1, 1]} : vector<30x16x128xf32> to vector<1x16x128xf32>
    %84 = vector.shape_cast %83 : vector<1x16x128xf32> to vector<16x128xf32>
    %85 = vector.extract_strided_slice %0 {offsets = [6, 0, 0], sizes = [1, 16, 128], strides = [1, 1, 1]} : vector<30x16x128xf32> to vector<1x16x128xf32>
    %86 = vector.shape_cast %85 : vector<1x16x128xf32> to vector<16x128xf32>
    %87 = vector.extract_strided_slice %0 {offsets = [7, 0, 0], sizes = [1, 16, 128], strides = [1, 1, 1]} : vector<30x16x128xf32> to vector<1x16x128xf32>
    %88 = vector.shape_cast %87 : vector<1x16x128xf32> to vector<16x128xf32>
    %89 = vector.extract_strided_slice %0 {offsets = [8, 0, 0], sizes = [1, 16, 128], strides = [1, 1, 1]} : vector<30x16x128xf32> to vector<1x16x128xf32>
    %90 = vector.shape_cast %89 : vector<1x16x128xf32> to vector<16x128xf32>
    %cst_24 = arith.constant 0.142857149 : f32
    %91 = vector.broadcast %cst_24 : f32 to vector<16x128xf32>
    %92 = arith.mulf %84, %91 : vector<16x128xf32>
    %cst_25 = arith.constant 0.142857149 : f32
    %93 = vector.broadcast %cst_25 : f32 to vector<16x128xf32>
    %94 = arith.mulf %86, %93 : vector<16x128xf32>
    %cst_26 = arith.constant 5.000000e-01 : f32
    %95 = vector.broadcast %cst_26 : f32 to vector<16x128xf32>
    %96 = arith.mulf %95, %88 : vector<16x128xf32>
    %cst_27 = arith.constant 5.000000e-01 : f32
    %97 = vector.broadcast %cst_27 : f32 to vector<16x128xf32>
    %98 = arith.mulf %97, %90 : vector<16x128xf32>
    %99 = arith.subf %92, %96 : vector<16x128xf32>
    %100 = arith.subf %94, %98 : vector<16x128xf32>
    %101 = arith.addf %92, %96 : vector<16x128xf32>
    %102 = arith.addf %94, %98 : vector<16x128xf32>
    %103 = arith.minimumf %101, %39 : vector<16x128xf32>
    %104 = arith.maximumf %99, %37 : vector<16x128xf32>
    %105 = arith.subf %103, %104 : vector<16x128xf32>
    %cst_28 = arith.constant 0.000000e+00 : f32
    %106 = vector.broadcast %cst_28 : f32 to vector<16x128xf32>
    %107 = arith.maximumf %105, %106 : vector<16x128xf32>
    %108 = arith.minimumf %102, %40 : vector<16x128xf32>
    %109 = arith.maximumf %100, %38 : vector<16x128xf32>
    %110 = arith.subf %108, %109 : vector<16x128xf32>
    %cst_29 = arith.constant 0.000000e+00 : f32
    %111 = vector.broadcast %cst_29 : f32 to vector<16x128xf32>
    %112 = arith.maximumf %110, %111 : vector<16x128xf32>
    %113 = arith.mulf %107, %112 : vector<16x128xf32>
    %114 = arith.subf %101, %99 : vector<16x128xf32>
    %115 = arith.subf %102, %100 : vector<16x128xf32>
    %116 = arith.mulf %114, %115 : vector<16x128xf32>
    %117 = arith.subf %39, %37 : vector<16x128xf32>
    %118 = arith.subf %40, %38 : vector<16x128xf32>
    %119 = arith.mulf %117, %118 : vector<16x128xf32>
    %120 = arith.addf %116, %119 : vector<16x128xf32>
    %121 = arith.subf %120, %113 : vector<16x128xf32>
    %cst_30 = arith.constant 1.000000e+00 : f32
    %122 = vector.broadcast %cst_30 : f32 to vector<16x128xf32>
    %123 = arith.select %6, %121, %122 : vector<16x128xi1>, vector<16x128xf32>
    %124 = arith.divf %113, %123 : vector<16x128xf32>
    %125 = arith.cmpf ogt, %82, %124 : vector<16x128xf32>
    %126 = arith.select %125, %82, %124 : vector<16x128xi1>, vector<16x128xf32>
    %127 = vector.extract_strided_slice %0 {offsets = [0, 0, 0], sizes = [1, 16, 128], strides = [1, 1, 1]} : vector<30x16x128xf32> to vector<1x16x128xf32>
    %128 = vector.shape_cast %127 : vector<1x16x128xf32> to vector<16x128xf32>
    %129 = vector.extract_strided_slice %0 {offsets = [5, 0, 0], sizes = [1, 16, 128], strides = [1, 1, 1]} : vector<30x16x128xf32> to vector<1x16x128xf32>
    %130 = vector.shape_cast %129 : vector<1x16x128xf32> to vector<16x128xf32>
    %131 = arith.select %125, %128, %130 : vector<16x128xi1>, vector<16x128xf32>
    %132 = vector.extract_strided_slice %0 {offsets = [1, 0, 0], sizes = [1, 16, 128], strides = [1, 1, 1]} : vector<30x16x128xf32> to vector<1x16x128xf32>
    %133 = vector.shape_cast %132 : vector<1x16x128xf32> to vector<16x128xf32>
    %134 = vector.extract_strided_slice %0 {offsets = [6, 0, 0], sizes = [1, 16, 128], strides = [1, 1, 1]} : vector<30x16x128xf32> to vector<1x16x128xf32>
    %135 = vector.shape_cast %134 : vector<1x16x128xf32> to vector<16x128xf32>
    %136 = arith.select %125, %133, %135 : vector<16x128xi1>, vector<16x128xf32>
    %137 = vector.extract_strided_slice %0 {offsets = [2, 0, 0], sizes = [1, 16, 128], strides = [1, 1, 1]} : vector<30x16x128xf32> to vector<1x16x128xf32>
    %138 = vector.shape_cast %137 : vector<1x16x128xf32> to vector<16x128xf32>
    %139 = vector.extract_strided_slice %0 {offsets = [7, 0, 0], sizes = [1, 16, 128], strides = [1, 1, 1]} : vector<30x16x128xf32> to vector<1x16x128xf32>
    %140 = vector.shape_cast %139 : vector<1x16x128xf32> to vector<16x128xf32>
    %141 = arith.select %125, %138, %140 : vector<16x128xi1>, vector<16x128xf32>
    %142 = vector.extract_strided_slice %0 {offsets = [3, 0, 0], sizes = [1, 16, 128], strides = [1, 1, 1]} : vector<30x16x128xf32> to vector<1x16x128xf32>
    %143 = vector.shape_cast %142 : vector<1x16x128xf32> to vector<16x128xf32>
    %144 = vector.extract_strided_slice %0 {offsets = [8, 0, 0], sizes = [1, 16, 128], strides = [1, 1, 1]} : vector<30x16x128xf32> to vector<1x16x128xf32>
    %145 = vector.shape_cast %144 : vector<1x16x128xf32> to vector<16x128xf32>
    %146 = arith.select %125, %143, %145 : vector<16x128xi1>, vector<16x128xf32>
    %147 = vector.extract_strided_slice %0 {offsets = [4, 0, 0], sizes = [1, 16, 128], strides = [1, 1, 1]} : vector<30x16x128xf32> to vector<1x16x128xf32>
    %148 = vector.shape_cast %147 : vector<1x16x128xf32> to vector<16x128xf32>
    %149 = vector.extract_strided_slice %0 {offsets = [9, 0, 0], sizes = [1, 16, 128], strides = [1, 1, 1]} : vector<30x16x128xf32> to vector<1x16x128xf32>
    %150 = vector.shape_cast %149 : vector<1x16x128xf32> to vector<16x128xf32>
    %151 = arith.select %125, %148, %150 : vector<16x128xi1>, vector<16x128xf32>
    %152 = vector.extract_strided_slice %1 {offsets = [0, 0, 0], sizes = [1, 16, 128], strides = [1, 1, 1]} : vector<4x16x128xf32> to vector<1x16x128xf32>
    %153 = vector.shape_cast %152 : vector<1x16x128xf32> to vector<16x128xf32>
    %154 = arith.subf %131, %153 : vector<16x128xf32>
    %155 = vector.extract_strided_slice %1 {offsets = [1, 0, 0], sizes = [1, 16, 128], strides = [1, 1, 1]} : vector<4x16x128xf32> to vector<1x16x128xf32>
    %156 = vector.shape_cast %155 : vector<1x16x128xf32> to vector<16x128xf32>
    %157 = arith.subf %136, %156 : vector<16x128xf32>
    %cst_31 = arith.constant 1.000000e+00 : f32
    %158 = vector.broadcast %cst_31 : f32 to vector<16x128xf32>
    %159 = arith.select %6, %141, %158 : vector<16x128xi1>, vector<16x128xf32>
    %160 = math.sqrt %159 : vector<16x128xf32>
    %161 = vector.extract_strided_slice %1 {offsets = [2, 0, 0], sizes = [1, 16, 128], strides = [1, 1, 1]} : vector<4x16x128xf32> to vector<1x16x128xf32>
    %162 = vector.shape_cast %161 : vector<1x16x128xf32> to vector<16x128xf32>
    %cst_32 = arith.constant 1.000000e+00 : f32
    %163 = vector.broadcast %cst_32 : f32 to vector<16x128xf32>
    %164 = arith.select %6, %162, %163 : vector<16x128xi1>, vector<16x128xf32>
    %165 = math.sqrt %164 : vector<16x128xf32>
    %166 = arith.subf %160, %165 : vector<16x128xf32>
    %cst_33 = arith.constant 1.000000e+00 : f32
    %167 = vector.broadcast %cst_33 : f32 to vector<16x128xf32>
    %168 = arith.select %6, %146, %167 : vector<16x128xi1>, vector<16x128xf32>
    %169 = math.sqrt %168 : vector<16x128xf32>
    %170 = vector.extract_strided_slice %1 {offsets = [3, 0, 0], sizes = [1, 16, 128], strides = [1, 1, 1]} : vector<4x16x128xf32> to vector<1x16x128xf32>
    %171 = vector.shape_cast %170 : vector<1x16x128xf32> to vector<16x128xf32>
    %cst_34 = arith.constant 1.000000e+00 : f32
    %172 = vector.broadcast %cst_34 : f32 to vector<16x128xf32>
    %173 = arith.select %6, %171, %172 : vector<16x128xi1>, vector<16x128xf32>
    %174 = math.sqrt %173 : vector<16x128xf32>
    %175 = arith.subf %169, %174 : vector<16x128xf32>
    %176 = arith.mulf %154, %154 : vector<16x128xf32>
    %177 = arith.mulf %157, %157 : vector<16x128xf32>
    %178 = arith.addf %176, %177 : vector<16x128xf32>
    %179 = arith.mulf %166, %166 : vector<16x128xf32>
    %180 = arith.addf %178, %179 : vector<16x128xf32>
    %181 = arith.mulf %175, %175 : vector<16x128xf32>
    %182 = arith.addf %180, %181 : vector<16x128xf32>
    %183 = arith.subf %151, %126 : vector<16x128xf32>
    %184 = arith.mulf %183, %183 : vector<16x128xf32>
    %185 = arith.mulf %4, %12 : vector<16x128xf32>
    %cst_35 = arith.constant dense<0.000000e+00> : vector<128xf32>
    %186 = vector.multi_reduction <add>, %185, %cst_35 [0] : vector<16x128xf32> to vector<128xf32>
    %187 = vector.shape_cast %186 : vector<128xf32> to vector<1x128xf32>
    %c0_36 = arith.constant 0 : index
    %c0_37 = arith.constant 0 : index
    %c0_38 = arith.constant 0 : index
    %188 = vector.load %arg5[%c0_36, %c0_37, %c0_38] : memref<1x4x128xf32, #tpu.memory_space<vmem>>, vector<1x1x128xf32>
    %189 = vector.shape_cast %188 : vector<1x1x128xf32> to vector<1x128xf32>
    %190 = vector.shape_cast %187 : vector<1x128xf32> to vector<1x1x128xf32>
    tpu.vector_store %arg5[%c0_36, %c0_37, %c0_38], %190 {strides = array<i32>} : memref<1x4x128xf32, #tpu.memory_space<vmem>>, vector<1x1x128xf32>,
    %cst_39 = arith.constant dense<0.000000e+00> : vector<128xf32>
    %191 = vector.multi_reduction <add>, %20, %cst_39 [0] : vector<16x128xf32> to vector<128xf32>
    %192 = vector.shape_cast %191 : vector<128xf32> to vector<1x128xf32>
    %c0_40 = arith.constant 0 : index
    %c1 = arith.constant 1 : index
    %c0_41 = arith.constant 0 : index
    %193 = vector.load %arg5[%c0_40, %c1, %c0_41] : memref<1x4x128xf32, #tpu.memory_space<vmem>>, vector<1x1x128xf32>
    %194 = vector.shape_cast %193 : vector<1x1x128xf32> to vector<1x128xf32>
    %195 = vector.shape_cast %192 : vector<1x128xf32> to vector<1x1x128xf32>
    tpu.vector_store %arg5[%c0_40, %c1, %c0_41], %195 {strides = array<i32>} : memref<1x4x128xf32, #tpu.memory_space<vmem>>, vector<1x1x128xf32>,
    %196 = arith.mulf %4, %182 : vector<16x128xf32>
    %cst_42 = arith.constant dense<0.000000e+00> : vector<128xf32>
    %197 = vector.multi_reduction <add>, %196, %cst_42 [0] : vector<16x128xf32> to vector<128xf32>
    %198 = vector.shape_cast %197 : vector<128xf32> to vector<1x128xf32>
    %c0_43 = arith.constant 0 : index
    %c2 = arith.constant 2 : index
    %c0_44 = arith.constant 0 : index
    %199 = vector.load %arg5[%c0_43, %c2, %c0_44] : memref<1x4x128xf32, #tpu.memory_space<vmem>>, vector<1x1x128xf32>
    %200 = vector.shape_cast %199 : vector<1x1x128xf32> to vector<1x128xf32>
    %201 = vector.shape_cast %198 : vector<1x128xf32> to vector<1x1x128xf32>
    tpu.vector_store %arg5[%c0_43, %c2, %c0_44], %201 {strides = array<i32>} : memref<1x4x128xf32, #tpu.memory_space<vmem>>, vector<1x1x128xf32>,
    %202 = arith.mulf %4, %184 : vector<16x128xf32>
    %cst_45 = arith.constant dense<0.000000e+00> : vector<128xf32>
    %203 = vector.multi_reduction <add>, %202, %cst_45 [0] : vector<16x128xf32> to vector<128xf32>
    %204 = vector.shape_cast %203 : vector<128xf32> to vector<1x128xf32>
    %c0_46 = arith.constant 0 : index
    %c3 = arith.constant 3 : index
    %c0_47 = arith.constant 0 : index
    %205 = vector.load %arg5[%c0_46, %c3, %c0_47] : memref<1x4x128xf32, #tpu.memory_space<vmem>>, vector<1x1x128xf32>
    %206 = vector.shape_cast %205 : vector<1x1x128xf32> to vector<1x128xf32>
    %207 = vector.shape_cast %204 : vector<1x128xf32> to vector<1x1x128xf32>
    tpu.vector_store %arg5[%c0_46, %c3, %c0_47], %207 {strides = array<i32>} : memref<1x4x128xf32, #tpu.memory_space<vmem>>, vector<1x1x128xf32>,
    return
  }
  func.func @transform_0(%arg0: i32) -> (i32, i32, i32) {
    %c0_i32 = arith.constant 0 : i32
    %c0_i32_0 = arith.constant 0 : i32
    %c0_i32_1 = arith.constant 0 : i32
    return %c0_i32, %arg0, %c0_i32_0 : i32, i32, i32
  }
  func.func @transform_1(%arg0: i32) -> (i32, i32, i32) {
    %c0_i32 = arith.constant 0 : i32
    %c0_i32_0 = arith.constant 0 : i32
    %c0_i32_1 = arith.constant 0 : i32
    return %c0_i32, %arg0, %c0_i32_0 : i32, i32, i32
  }
  func.func @transform_2(%arg0: i32) -> (i32, i32, i32) {
    %c0_i32 = arith.constant 0 : i32
    %c0_i32_0 = arith.constant 0 : i32
    %c0_i32_1 = arith.constant 0 : i32
    return %c0_i32, %arg0, %c0_i32_0 : i32, i32, i32
  }
  func.func @transform_3(%arg0: i32) -> (i32, i32, i32) {
    %c0_i32 = arith.constant 0 : i32
    %c0_i32_0 = arith.constant 0 : i32
    %c0_i32_1 = arith.constant 0 : i32
    return %c0_i32, %arg0, %c0_i32_0 : i32, i32, i32
  }
  func.func @transform_4(%arg0: i32) -> (i32, i32, i32) {
    %c0_i32 = arith.constant 0 : i32
    %c0_i32_0 = arith.constant 0 : i32
    %c0_i32_1 = arith.constant 0 : i32
    return %arg0, %c0_i32, %c0_i32_0 : i32, i32, i32
  }
}

</mosaic_0001>

<bundles_post_ra>
// kernel: tpu_custom_call.1
= control target key start
LH: loop header
LB: loop body
LE: loop exit
PB: predicated region body
PF: predicated region fallthrough
CT: control target
= control target key end

     0   :  { %9 = vsyncpa [#allocation3], 0  ;;  %s1419_s0 = inlined_call_operand.hbm [shape: f32[30,16,128], index: 0, kind: input, shape index: {}]   ;;  %s1420_s1 = inlined_call_operand.hbm [shape: f32[4,16,128], index: 1, kind: input, shape index: {}]   ;;  %s1421_s2 = inlined_call_operand.hbm [shape: f32[20,16,128], index: 2, kind: input, shape index: {}]   ;;  %s1422_s3 = inlined_call_operand.hbm [shape: f32[1,16,128], index: 3, kind: input, shape index: {}]   ;;  %s1423_s4 = inlined_call_operand.hbm [shape: f32[1,4,128], index: 4, kind: output, shape index: {}]  }
   0x1   :  { %10 = vsyncpa [#allocation6], 0 }
   0x2   :  { %11 = vsyncpa [#allocation9], 0 }
   0x3   :  { %12 = vsyncpa [#allocation4], 0  ;;  %s743_s15 = smov [#allocation5]   ;;  %s744_s17 = smov [#allocation2]  }
   0x4   :  { %s30_s16 = sshll.u32 %s743_s15, 4  ;;  %s18_s18 = sshll.u32 %s744_s17, 4  ;;  %s31_s16 = int_to_ptr.vmem [resolvable:$true] %s30_s16  ;;  %s775_s18 = int_to_ptr.vmem [resolvable:$true] %s18_s18 }
   0x5   :  { %s625_s21 = scalar_lea.hbm %s1420_s1, 1024 }
   0x6   :  { %p626_p0 = scmp.ne.s32.totalorder %s1420_s1, %s625_s21  ;;  %p629_p1 = scmp.lt.u32.totalorder %s625_s21, %s1420_s1 }
   0x8   :  { %p631_p2 = pnand %p629_p1, %p626_p0 }
   0xa   :  { %634 = shalt.err (!%p631_p2)
}
   0xb   :  { %s635_s26 = scalar_lea.vmem %s31_s16, 1024  ;;  %p640_p4 = scmp.lt.s32.totalorder %s31_s16, %s31_s16 }
   0xc   :  { %p636_p3 = scmp.ne.s32.totalorder %s31_s16, %s635_s26  ;;  %p641_p5 = scmp.lt.s32.totalorder %s635_s26, %s635_s26 }
   0xe   :  { %p642_p6 = por %p641_p5, %p640_p4 }
  0x10   :  { %p643_p7 = pnand %p642_p6, %p636_p3 }
  0x12   :  { %646 = shalt.err (!%p643_p7)
}
  0x13   :  { %s745_s27 = smov 128   ;;  %s746_s28 = smov 8  }
  0x14   :  { %36 = dma.hbm_to_vmem [thread:$0]  %s1420_s1, 1024, %s31_s16, [#allocation6], %s745_s27, %s745_s27, %s746_s28  }
  0x15   :  { %s647_s7 = scalar_lea.hbm %s1419_s0, 7680 }
  0x16   :  { %p648_p8 = scmp.ne.s32.totalorder %s1419_s0, %s647_s7  ;;  %p651_p9 = scmp.lt.u32.totalorder %s647_s7, %s1419_s0 }
  0x18   :  { %p653_p10 = pnand %p651_p9, %p648_p8 }
  0x1a   :  { %656 = shalt.err (!%p653_p10)
}
  0x1b   :  { %s657_s12 = scalar_lea.vmem %s775_s18, 7680  ;;  %p662_p12 = scmp.lt.s32.totalorder %s775_s18, %s775_s18 }
  0x1c   :  { %p658_p11 = scmp.ne.s32.totalorder %s775_s18, %s657_s12  ;;  %p663_p13 = scmp.lt.s32.totalorder %s657_s12, %s657_s12 }
  0x1e   :  { %p664_p0 = por %p663_p13, %p662_p12 }
  0x20   :  { %p665_p1 = pnand %p664_p0, %p658_p11 }
  0x22   :  { %668 = shalt.err (!%p665_p1)
}
  0x23   :  { %24 = dma.hbm_to_vmem [thread:$0]  %s1419_s0, 7680, %s775_s18, [#allocation3], %s745_s27, %s745_s27, %s746_s28  }
  0x24   :  { %s747_s14 = smov [#allocation7]   ;;  %s748_s16 = smov [#allocation8]  }
  0x25   :  { %s42_s15 = sshll.u32 %s747_s14, 4  ;;  %s54_s17 = sshll.u32 %s748_s16, 4  ;;  %s43_s15 = int_to_ptr.vmem [resolvable:$true] %s42_s15  ;;  %s812_s17 = int_to_ptr.vmem [resolvable:$true] %s54_s17 }
  0x26   :  { %s669_s21 = scalar_lea.hbm %s1421_s2, 5120 }
  0x27   :  { %p670_p2 = scmp.ne.s32.totalorder %s1421_s2, %s669_s21  ;;  %p673_p3 = scmp.lt.u32.totalorder %s669_s21, %s1421_s2 }
  0x29   :  { %p675_p4 = pnand %p673_p3, %p670_p2 }
  0x2b   :  { %678 = shalt.err (!%p675_p4)
}
  0x2c   :  { %s679_s0 = scalar_lea.vmem %s43_s15, 5120  ;;  %p684_p6 = scmp.lt.s32.totalorder %s43_s15, %s43_s15 }
  0x2d   :  { %p680_p5 = scmp.ne.s32.totalorder %s43_s15, %s679_s0  ;;  %p685_p7 = scmp.lt.s32.totalorder %s679_s0, %s679_s0 }
  0x2f   :  { %p686_p8 = por %p685_p7, %p684_p6 }
  0x31   :  { %p687_p9 = pnand %p686_p8, %p680_p5 }
  0x33   :  { %690 = shalt.err (!%p687_p9)
}
  0x34   :  { %48 = dma.hbm_to_vmem [thread:$0]  %s1421_s2, 5120, %s43_s15, [#allocation6], %s745_s27, %s745_s27, %s746_s28  }
  0x35   :  { %s691_s5 = scalar_lea.hbm %s1422_s3, 256 }
  0x36   :  { %p692_p10 = scmp.ne.s32.totalorder %s1422_s3, %s691_s5  ;;  %p695_p11 = scmp.lt.u32.totalorder %s691_s5, %s1422_s3 }
  0x38   :  { %p697_p12 = pnand %p695_p11, %p692_p10 }
  0x3a   :  { %700 = shalt.err (!%p697_p12)
}
  0x3b   :  { %s701_s10 = scalar_lea.vmem %s812_s17, 256  ;;  %p706_p0 = scmp.lt.s32.totalorder %s812_s17, %s812_s17 }
  0x3c   :  { %p702_p13 = scmp.ne.s32.totalorder %s812_s17, %s701_s10  ;;  %p707_p1 = scmp.lt.s32.totalorder %s701_s10, %s701_s10 }
  0x3e   :  { %p708_p2 = por %p707_p1, %p706_p0 }
  0x40   :  { %p709_p3 = pnand %p708_p2, %p702_p13 }
  0x42   :  { %712 = shalt.err (!%p709_p3)
}
  0x43   :  { %60 = dma.hbm_to_vmem [thread:$0]  %s1422_s3, 256, %s812_s17, [#allocation9], %s745_s27, %s745_s27, %s746_s28  }
  0x44   :  { %735 = dma.done.wait [#allocation3], 7680  }
  0x45   :  { %736 = vsyncadd [#allocation3], 4294959616 }
  0x46   :  { %737 = dma.done.wait [#allocation6], 6144  }
  0x47   :  { %738 = vsyncadd [#allocation6], 4294961152 }
  0x48   :  { %739 = dma.done.wait [#allocation9], 256  }
  0x49   :  { %740 = vsyncadd [#allocation9], 4294967040  ;;  %v849_v0 = vld [vmem:[#allocation2] sm:$0xff]  ;;  %v851_v1 = vld [vmem:[#allocation2 + $0x8] sm:$0xff]  ;;  %s749_s3 = smov [#allocation10]  }
  0x4a   :  { %1473 = vst [vmem:[#allocation15_spill] sm:$0xff] %v849_v0  ;;  %1474 = vst [vmem:[#allocation16_spill] sm:$0xff] %v851_v1  ;;  %v853_v2 = vld [vmem:[#allocation2 + $0x20] sm:$0xff]  ;;  %v855_v3 = vld [vmem:[#allocation2 + $0x28] sm:$0xff]  ;;  %v329_v8 = vmul.f32 0.14285715, %v849_v0 }
  0x4b   :  { %1475 = vst [vmem:[#allocation17_spill] sm:$0xff] %v853_v2  ;;  %1476 = vst [vmem:[#allocation18_spill] sm:$0xff] %v855_v3  ;;  %v857_v4 = vld [vmem:[#allocation2 + $0x10] sm:$0xff]  ;;  %v861_v6 = vld [vmem:[#allocation2 + $0x18] sm:$0xff]  ;;  %v330_v9 = vmul.f32 0.14285715, %v851_v1 }
  0x4c   :  { %1477 = vst [vmem:[#allocation19_spill] sm:$0xff] %v857_v4  ;;  %v859_v5 = vld [vmem:[#allocation2 + $0x30] sm:$0xff]  ;;  %1479 = vst [vmem:[#allocation21_spill] sm:$0xff] %v861_v6  ;;  %v863_v7 = vld [vmem:[#allocation2 + $0x38] sm:$0xff]  ;;  %v333_v10 = vmul.f32 0.5, %v853_v2  ;;  %v334_v11 = vmul.f32 0.5, %v855_v3 }
  0x4d   :  { %1478 = vst [vmem:[#allocation20_spill] sm:$0xff] %v859_v5  ;;  %1480 = vst [vmem:[#allocation22_spill] sm:$0xff] %v863_v7  ;;  %v331_v12 = vmul.f32 0.14285715, %v857_v4  ;;  %v335_v13 = vmul.f32 0.5, %v859_v5  ;;  %v871_v14 = vld [vmem:[#allocation2 + $0x50] sm:$0xff] }
  0x4e   :  { %1481 = vst [vmem:[#allocation23_spill] sm:$0xff] %v871_v14  ;;  %v873_v15 = vld [vmem:[#allocation2 + $0x70] sm:$0xff]  ;;  %v332_v16 = vmul.f32 0.14285715, %v861_v6  ;;  %v336_v17 = vmul.f32 0.5, %v863_v7  ;;  %v877_v18 = vld [vmem:[#allocation2 + $0x40] sm:$0xff]  ;;  %v891_v25 = vsub.f32 %v329_v8, %v333_v10  ;;  %v893_v26 = vsub.f32 %v330_v9, %v334_v11 }
  0x4f   :  { %1482 = vst [vmem:[#allocation24_spill] sm:$0xff] %v873_v15  ;;  %1483 = vst [vmem:[#allocation25_spill] sm:$0xff] %v877_v18  ;;  %v879_v19 = vld [vmem:[#allocation2 + $0x58] sm:$0xff]  ;;  %v881_v20 = vld [vmem:[#allocation2 + $0x60] sm:$0xff]  ;;  %v895_v27 = vadd.f32 %v333_v10, %v329_v8  ;;  %v897_v28 = vadd.f32 %v334_v11, %v330_v9  ;;  %v905_v32 = vsub.f32 %v331_v12, %v335_v13  ;;  %v385_v34 = vmul.f32 0.14285715, %v871_v14 }
  0x50   :  { %1484 = vst [vmem:[#allocation26_spill] sm:$0xff] %v879_v19  ;;  %1485 = vst [vmem:[#allocation27_spill] sm:$0xff] %v881_v20  ;;  %v883_v21 = vld [vmem:[#allocation2 + $0x80] sm:$0xff]  ;;  %v885_v22 = vld [vmem:[#allocation2 + $0x68] sm:$0xff]  ;;  %v907_v33 = vadd.f32 %v335_v13, %v331_v12  ;;  %v389_v35 = vmul.f32 0.5, %v873_v15  ;;  %v911_v36 = vsub.f32 %v332_v16, %v336_v17  ;;  %v913_v37 = vadd.f32 %v336_v17, %v332_v16  ;;  %s583_s27 = sshll.u32 %s749_s3, 4  ;;  %s584_s27 = int_to_ptr.vmem [resolvable:$true] %s583_s27 }
  0x51   :  { %1486 = vst [vmem:[#allocation28_spill] sm:$0xff] %v883_v21  ;;  %1487 = vst [vmem:[#allocation29_spill] sm:$0xff] %v885_v22  ;;  %v887_v23 = vld [vmem:[#allocation2 + $0x78] sm:$0xff]  ;;  %v889_v24 = vld [vmem:[#allocation2 + $0x88] sm:$0xff]  ;;  %v387_v38 = vmul.f32 0.14285715, %v881_v20  ;;  %v305_v44 = vmul.f32 %v877_v18, %v877_v18  ;;  %v363_v48 = vsub.f32 %v895_v27, %v891_v25  ;;  %v364_v49 = vsub.f32 %v897_v28, %v893_v26  ;;  %p718_p5 = scmp.lt.s32.totalorder %s584_s27, %s584_s27 }
  0x52   :  { %1488 = vst [vmem:[#allocation30_spill] sm:$0xff] %v887_v23  ;;  %1489 = vst [vmem:[#allocation31_spill] sm:$0xff] %v889_v24  ;;  %v899_v29 = vld [vmem:[#allocation2 + $0x48] sm:$0xff]  ;;  %v901_v30 = vld [vmem:[#allocation2 + $0x90] sm:$0xff]  ;;  %v391_v39 = vmul.f32 0.5, %v883_v21  ;;  %v390_v42 = vmul.f32 0.5, %v887_v23  ;;  %v365_v50 = vsub.f32 %v907_v33, %v905_v32  ;;  %v366_v51 = vsub.f32 %v913_v37, %v911_v36 }
  0x53   :  { %1490 = vst [vmem:[#allocation32_spill] sm:$0xff] %v891_v25  ;;  %1491 = vst [vmem:[#allocation33_spill] sm:$0xff] %v893_v26  ;;  %v903_v31 = vld [vmem:[#allocation2 + $0x98] sm:$0xff]  ;;  %v386_v40 = vmul.f32 0.14285715, %v879_v19  ;;  %v392_v43 = vmul.f32 0.5, %v889_v24  ;;  %v306_v45 = vmul.f32 %v899_v29, %v899_v29  ;;  %v307_v46 = vmul.f32 %v901_v30, %v901_v30 }
  0x54   :  { %1492 = vst [vmem:[#allocation34_spill] sm:$0xff] %v895_v27  ;;  %1493 = vst [vmem:[#allocation35_spill] sm:$0xff] %v897_v28  ;;  %v388_v41 = vmul.f32 0.14285715, %v885_v22  ;;  %v308_v47 = vmul.f32 %v903_v31, %v903_v31  ;;  %v937_v52 = vsub.f32 %v385_v34, %v389_v35  ;;  %v939_v53 = vsub.f32 %v387_v38, %v391_v39  ;;  %v93_v56 = vld [vmem:[#allocation2 + $0xa0] sm:$0xff]  ;;  %v94_v57 = vld [vmem:[#allocation2 + $0xa8] sm:$0xff] }
  0x55   :  { %1494 = vst [vmem:[#allocation36_spill] sm:$0xff] %v899_v29  ;;  %1495 = vst [vmem:[#allocation37_spill] sm:$0xff] %v901_v30  ;;  %v941_v54 = vadd.f32 %v389_v35, %v385_v34  ;;  %v943_v55 = vadd.f32 %v391_v39, %v387_v38  ;;  %v945_v58 = vsub.f32 %v386_v40, %v390_v42  ;;  %v95_v62 = vld [vmem:[#allocation2 + $0xb0] sm:$0xff]  ;;  %v953_v63 = vld [vmem:[#allocation5] sm:$0xff]  ;;  %s713_s28 = scalar_lea.vmem %s584_s27, 64 }
  0x56   :  { %1496 = vst [vmem:[#allocation38_spill] sm:$0xff] %v903_v31  ;;  %1497 = vst [vmem:[#allocation39_spill] sm:$0xff] %v905_v32  ;;  %v947_v59 = vsub.f32 %v388_v41, %v392_v43  ;;  %v949_v60 = vadd.f32 %v390_v42, %v386_v40  ;;  %v951_v61 = vadd.f32 %v392_v43, %v388_v41  ;;  %v955_v8 = vld [vmem:[#allocation5 + $0x8] sm:$0xff]  ;;  %v141_v9 = vld [vmem:[#allocation7] sm:$0xff]  ;;  %v978_v14 = vmul.f32 0.14285715, %v953_v63  ;;  %p714_p4 = scmp.ne.s32.totalorder %s584_s27, %s713_s28  ;;  %p719_p6 = scmp.lt.s32.totalorder %s713_s28, %s713_s28 }
  0x57   :  { %1498 = vst [vmem:[#allocation40_spill] sm:$0xff] %v907_v33  ;;  %1499 = vst [vmem:[#allocation41_spill] sm:$0xff] %v911_v36  ;;  %v419_v10 = vsub.f32 %v941_v54, %v937_v52  ;;  %v421_v11 = vsub.f32 %v943_v55, %v939_v53  ;;  %v96_v12 = vld [vmem:[#allocation2 + $0xb8] sm:$0xff]  ;;  %v97_v13 = vld [vmem:[#allocation2 + $0xc0] sm:$0xff]  ;;  %v973_v18 = vadd.f32 %v307_v46, %v305_v44  ;;  %v985_v23 = vmul.f32 0.14285715, %v955_v8 }
  0x58   :  { %1500 = vst [vmem:[#allocation42_spill] sm:$0xff] %v913_v37  ;;  %1501 = vst [vmem:[#allocation43_spill] sm:$0xff] %v937_v52  ;;  %v98_v16 = vld [vmem:[#allocation2 + $0xc8] sm:$0xff]  ;;  %v961_v17 = vld [vmem:[#allocation5 + $0x10] sm:$0xff]  ;;  %v420_v38 = vsub.f32 %v949_v60, %v945_v58  ;;  %v422_v39 = vsub.f32 %v951_v61, %v947_v59  ;;  %v975_v30 = vadd.f32 %v308_v47, %v306_v45  ;;  %p720_p7 = por %p719_p6, %p718_p5 }
  0x59   :  { %1502 = vst [vmem:[#allocation44_spill] sm:$0xff] %v939_v53  ;;  %1503 = vst [vmem:[#allocation45_spill] sm:$0xff] %v941_v54  ;;  %v963_v34 = vld [vmem:[#allocation5 + $0x20] sm:$0xff]  ;;  %v142_v35 = vld [vmem:[#allocation7 + $0x8] sm:$0xff]  ;;  %v187_v0 = vsub.f32 %v93_v56, %v141_v9  ;;  %v980_v7 = vmul.f32 %v365_v50, %v363_v48  ;;  %v982_v24 = vmul.f32 %v366_v51, %v364_v49 }
  0x5a   :  { %1504 = vst [vmem:[#allocation46_spill] sm:$0xff] %v943_v55  ;;  %1505 = vst [vmem:[#allocation47_spill] sm:$0xff] %v945_v58  ;;  %v99_v40 = vld [vmem:[#allocation2 + $0xd0] sm:$0xff]  ;;  %v100_v41 = vld [vmem:[#allocation2 + $0xd8] sm:$0xff]  ;;  %v188_v3 = vsub.f32 %v94_v57, %v142_v35  ;;  %v988_v2 = vmul.f32 0.5, %v963_v34  ;;  %v990_v56 = vmul.f32 %v421_v11, %v419_v10  ;;  %v998_v35 = vmul.f32 %v422_v39, %v420_v38  ;;  %p721_p8 = pnand %p720_p7, %p714_p4 }
  0x5b   :  { %1506 = vst [vmem:[#allocation48_spill] sm:$0xff] %v947_v59  ;;  %1507 = vst [vmem:[#allocation49_spill] sm:$0xff] %v949_v60  ;;  %v101_v42 = vld [vmem:[#allocation2 + $0xe0] sm:$0xff]  ;;  %v969_v43 = vld [vmem:[#allocation5 + $0x18] sm:$0xff] }
  0x5c   :  { %1508 = vst [vmem:[#allocation50_spill] sm:$0xff] %v951_v61  ;;  %1509 = vst [vmem:[#allocation51_spill] sm:$0xff] %v953_v63  ;;  %v971_v29 = vld [vmem:[#allocation5 + $0x28] sm:$0xff]  ;;  %v143_v31 = vld [vmem:[#allocation7 + $0x10] sm:$0xff]  ;;  %v1001_v55 = vmul.f32 0.14285715, %v969_v43  ;;  %v1015_v54 = vmul.f32 %v188_v3, %v188_v3 }
  0x5d   :  { %1510 = vst [vmem:[#allocation52_spill] sm:$0xff] %v955_v8  ;;  %1511 = vst [vmem:[#allocation53_spill] sm:$0xff] %v961_v17  ;;  %v102_v6 = vld [vmem:[#allocation2 + $0xe8] sm:$0xff]  ;;  %v103_v22 = vld [vmem:[#allocation2 + $0xf0] sm:$0xff]  ;;  %v189_v15 = vsub.f32 %v95_v62, %v143_v31  ;;  %v996_v57 = vmul.f32 0.5, %v971_v29 }
  0x5e   :  { %1512 = vst [vmem:[#allocation54_spill] sm:$0xff] %v963_v34  ;;  %1513 = vst [vmem:[#allocation55_spill] sm:$0xff] %v969_v43  ;;  %v104_v4 = vld [vmem:[#allocation2 + $0xf8] sm:$0xff]  ;;  %v145_v1 = vld [vmem:[#allocation7 + $0x20] sm:$0xff] }
  0x5f   :  { %1514 = vst [vmem:[#allocation56_spill] sm:$0xff] %v971_v29  ;;  %1515 = vst [vmem:[#allocation57_spill] sm:$0xff] %v973_v18  ;;  %v144_v20 = vld [vmem:[#allocation7 + $0x18] sm:$0xff]  ;;  %v146_v19 = vld [vmem:[#allocation7 + $0x28] sm:$0xff]  ;;  %v191_v53 = vsub.f32 %v97_v13, %v145_v1  ;;  %v1017_v37 = vmul.f32 %v189_v15, %v189_v15 }
  0x60   :  { %1516 = vst [vmem:[#allocation58_spill] sm:$0xff] %v975_v30  ;;  %1517 = vst [vmem:[#allocation59_spill] sm:$0xff] %v978_v14  ;;  %v105_v5 = vld [vmem:[#allocation2 + $0x100] sm:$0xff]  ;;  %v106_v21 = vld [vmem:[#allocation2 + $0x108] sm:$0xff]  ;;  %v993_v30 = vmul.f32 0.14285715, %v961_v17  ;;  %v190_v59 = vsub.f32 %v96_v12, %v144_v20  ;;  %v192_v61 = vsub.f32 %v98_v16, %v146_v19 }
  0x61   :  { %1518 = vst [vmem:[#allocation60_spill] sm:$0xff] %v980_v7  ;;  %1519 = vst [vmem:[#allocation61_spill] sm:$0xff] %v982_v24  ;;  %v107_v44 = vld [vmem:[#allocation2 + $0x110] sm:$0xff]  ;;  %v148_v45 = vld [vmem:[#allocation7 + $0x38] sm:$0xff]  ;;  %v1007_v24 = vmul.f32 %v187_v0, %v187_v0 }
  0x62   :  { %v147_v46 = vld [vmem:[#allocation7 + $0x30] sm:$0xff]  ;;  %v149_v47 = vld [vmem:[#allocation7 + $0x40] sm:$0xff]  ;;  %1520 = vst [vmem:[#allocation62_spill] sm:$0xff] %v985_v23  ;;  %1521 = vst [vmem:[#allocation63_spill] sm:$0xff] %v988_v2  ;;  %v1003_v39 = vsub.f32 %v100_v41, %v148_v45  ;;  %v1019_v25 = vmul.f32 %v190_v59, %v190_v59  ;;  %v232_v59 = vmul.f32 %v192_v61, %v192_v61 }
  0x63   :  { %1522 = vst [vmem:[#allocation64_spill] sm:$0xff] %v990_v56  ;;  %v108_v9 = vld [vmem:[#allocation2 + $0x118] sm:$0xff]  ;;  %v109_v48 = vld [vmem:[#allocation2 + $0x120] sm:$0xff]  ;;  %v110_v50 = vld [vmem:[#allocation2 + $0x128] sm:$0xff]  ;;  %v193_v38 = vsub.f32 %v99_v40, %v147_v46 }
  0x64   :  { %v150_v49 = vld [vmem:[#allocation7 + $0x48] sm:$0xff]  ;;  %v151_v51 = vld [vmem:[#allocation7 + $0x50] sm:$0xff]  ;;  %v152_v63 = vld [vmem:[#allocation7 + $0x58] sm:$0xff]  ;;  %1523 = vst [vmem:[#allocation65_spill] sm:$0xff] %v993_v30 }
  0x65   :  { %1524 = vst [vmem:[#allocation66_spill] sm:$0xff] %v996_v57  ;;  %1525 = vst [vmem:[#allocation67_spill] sm:$0xff] %v998_v35  ;;  %v111_v8 = vld [vmem:[#allocation2 + $0x130] sm:$0xff]  ;;  %v112_v18 = vld [vmem:[#allocation2 + $0x138] sm:$0xff]  ;;  %v1005_v35 = vsub.f32 %v101_v42, %v149_v47  ;;  %v1009_v16 = vsub.f32 %v102_v6, %v150_v49  ;;  %v1011_v43 = vsub.f32 %v103_v22, %v151_v51 }
  0x66   :  { %v113_v34 = vld [vmem:[#allocation2 + $0x140] sm:$0xff]  ;;  %v154_v11 = vld [vmem:[#allocation7 + $0x68] sm:$0xff]  ;;  %v155_v56 = vld [vmem:[#allocation7 + $0x70] sm:$0xff]  ;;  %1526 = vst [vmem:[#allocation68_spill] sm:$0xff] %v1001_v55  ;;  %v1013_v60 = vsub.f32 %v104_v4, %v152_v63 }
  0x67   :  { %v153_v10 = vld [vmem:[#allocation7 + $0x60] sm:$0xff]  ;;  %v114_v31 = vld [vmem:[#allocation2 + $0x148] sm:$0xff]  ;;  %v115_v62 = vld [vmem:[#allocation2 + $0x150] sm:$0xff]  ;;  %1527 = vst [vmem:[#allocation69_spill] sm:$0xff] %v1015_v54  ;;  %v200_v36 = vsub.f32 %v106_v21, %v154_v11  ;;  %v201_v32 = vsub.f32 %v107_v44, %v155_v56 }
  0x68   :  { %v116_v17 = vld [vmem:[#allocation2 + $0x158] sm:$0xff]  ;;  %v157_v29 = vld [vmem:[#allocation7 + $0x80] sm:$0xff]  ;;  %v158_v52 = vld [vmem:[#allocation7 + $0x88] sm:$0xff]  ;;  %v199_v47 = vsub.f32 %v105_v5, %v153_v10  ;;  %1528 = vst [vmem:[#allocation70_spill] sm:$0xff] %v1017_v37  ;;  %v1021_v10 = vmul.f32 %v191_v53, %v191_v53  ;;  %v233_v37 = vmul.f32 %v193_v38, %v193_v38 }
  0x69   :  { %v156_v58 = vld [vmem:[#allocation7 + $0x78] sm:$0xff]  ;;  %v117_v7 = vld [vmem:[#allocation2 + $0x160] sm:$0xff]  ;;  %v118_v20 = vld [vmem:[#allocation2 + $0x168] sm:$0xff]  ;;  %v203_v3 = vsub.f32 %v109_v48, %v157_v29  ;;  %v204_v26 = vsub.f32 %v110_v50, %v158_v52  ;;  %1529 = vst [vmem:[#allocation71_spill] sm:$0xff] %v1019_v25 }
  0x6a   :  { %v119_v1 = vld [vmem:[#allocation2 + $0x170] sm:$0xff]  ;;  %v160_v12 = vld [vmem:[#allocation7 + $0x98] sm:$0xff]  ;;  %v161_v13 = vld [vmem:[#allocation7 + $0xa0] sm:$0xff]  ;;  %v202_v63 = vsub.f32 %v108_v9, %v156_v58 }
  0x6b   :  { %v159_v19 = vld [vmem:[#allocation7 + $0x90] sm:$0xff]  ;;  %v120_v40 = vld [vmem:[#allocation2 + $0x178] sm:$0xff]  ;;  %v121_v41 = vld [vmem:[#allocation2 + $0x180] sm:$0xff]  ;;  %v206_v15 = vsub.f32 %v112_v18, %v160_v12  ;;  %v207_v56 = vsub.f32 %v113_v34, %v161_v13 }
  0x6c   :  { %v122_v42 = vld [vmem:[#allocation2 + $0x188] sm:$0xff]  ;;  %v163_v0 = vld [vmem:[#allocation7 + $0xb0] sm:$0xff]  ;;  %v164_v45 = vld [vmem:[#allocation7 + $0xb8] sm:$0xff]  ;;  %v205_v44 = vsub.f32 %v111_v8, %v159_v19 }
  0x6d   :  { %v162_v46 = vld [vmem:[#allocation7 + $0xa8] sm:$0xff]  ;;  %v123_v33 = vld [vmem:[#allocation2 + $0x190] sm:$0xff]  ;;  %v124_v6 = vld [vmem:[#allocation2 + $0x198] sm:$0xff]  ;;  %v209_v29 = vsub.f32 %v115_v62, %v163_v0  ;;  %v210_v52 = vsub.f32 %v116_v17, %v164_v45  ;;  %v1075_v45 = vmul.f32 %v207_v56, %v207_v56 }
  0x6e   :  { %v125_v49 = vld [vmem:[#allocation2 + $0x1a0] sm:$0xff]  ;;  %v166_v51 = vld [vmem:[#allocation7 + $0xc8] sm:$0xff]  ;;  %v167_v4 = vld [vmem:[#allocation7 + $0xd0] sm:$0xff]  ;;  %v208_v58 = vsub.f32 %v114_v31, %v162_v46  ;;  %v234_v31 = vmul.f32 %v1003_v39, %v1003_v39  ;;  %v240_v39 = vmul.f32 %v200_v36, %v200_v36  ;;  %v1071_v0 = vmul.f32 %v205_v44, %v205_v44 }
  0x6f   :  { %v165_v22 = vld [vmem:[#allocation7 + $0xc0] sm:$0xff]  ;;  %v126_v28 = vld [vmem:[#allocation2 + $0x1a8] sm:$0xff]  ;;  %v127_v27 = vld [vmem:[#allocation2 + $0x1b0] sm:$0xff]  ;;  %v212_v25 = vsub.f32 %v118_v20, %v166_v51  ;;  %v213_v54 = vsub.f32 %v119_v1, %v167_v4  ;;  %v236_v1 = vmul.f32 %v1009_v16, %v1009_v16  ;;  %v1059_v16 = vmul.f32 %v201_v32, %v201_v32 }
  0x70   :  { %v128_v55 = vld [vmem:[#allocation2 + $0x1b8] sm:$0xff]  ;;  %v169_v5 = vld [vmem:[#allocation7 + $0xe0] sm:$0xff]  ;;  %v170_v21 = vld [vmem:[#allocation7 + $0xe8] sm:$0xff]  ;;  %v211_v2 = vsub.f32 %v117_v7, %v165_v22  ;;  %v235_v7 = vmul.f32 %v1005_v35, %v1005_v35  ;;  %v239_v35 = vmul.f32 %v199_v47, %v199_v47  ;;  %v1077_v47 = vmul.f32 %v208_v58, %v208_v58 }
  0x71   :  { %v168_v30 = vld [vmem:[#allocation7 + $0xd8] sm:$0xff]  ;;  %v129_v11 = vld [vmem:[#allocation2 + $0x1c0] sm:$0xff]  ;;  %v171_v23 = vld [vmem:[#allocation7 + $0xf0] sm:$0xff]  ;;  %v1023_v19 = vsub.f32 %v121_v41, %v169_v5  ;;  %v1025_v12 = vsub.f32 %v122_v42, %v170_v21  ;;  %v1063_v41 = vmul.f32 %v203_v3, %v203_v3  ;;  %v1065_v42 = vmul.f32 %v204_v26, %v204_v26 }
  0x72   :  { %v172_v57 = vld [vmem:[#allocation7 + $0xf8] sm:$0xff]  ;;  %v173_v14 = vld [vmem:[#allocation7 + $0x100] sm:$0xff]  ;;  %v174_v9 = vld [vmem:[#allocation7 + $0x108] sm:$0xff]  ;;  %v214_v53 = vsub.f32 %v120_v40, %v168_v30  ;;  %v1029_v17 = vsub.f32 %v123_v33, %v171_v23  ;;  %v1061_v40 = vmul.f32 %v202_v63, %v202_v63  ;;  %v1079_v32 = vmul.f32 %v209_v29, %v209_v29 }
  0x73   :  { %v175_v48 = vld [vmem:[#allocation7 + $0x110] sm:$0xff]  ;;  %v176_v50 = vld [vmem:[#allocation7 + $0x118] sm:$0xff]  ;;  %v130_v8 = vld [vmem:[#allocation2 + $0x1c8] sm:$0xff]  ;;  %v1031_v61 = vsub.f32 %v124_v6, %v172_v57  ;;  %v1033_v62 = vsub.f32 %v125_v49, %v173_v14  ;;  %v1037_v38 = vsub.f32 %v126_v28, %v174_v9  ;;  %v237_v57 = vmul.f32 %v1011_v43, %v1011_v43 }
  0x74   :  { %v177_v18 = vld [vmem:[#allocation7 + $0x120] sm:$0xff]  ;;  %v178_v34 = vld [vmem:[#allocation7 + $0x128] sm:$0xff]  ;;  %v1039_v20 = vsub.f32 %v127_v27, %v175_v48  ;;  %v1041_v30 = vsub.f32 %v128_v55, %v176_v50  ;;  %v238_v27 = vmul.f32 %v1013_v60, %v1013_v60  ;;  %v1067_v46 = vld [vmem:[#allocation5 + $0x30] sm:$0xff]  ;;  %v1073_v60 = vmul.f32 %v206_v15, %v206_v15 }
  0x75   :  { %v1045_v13 = vld [vmem:[#allocation8] sm:$0xff]  ;;  %v1047_v23 = vld [vmem:[#allocation8 + $0x8] sm:$0xff]  ;;  %v1049_v33 = vsub.f32 %v129_v11, %v177_v18  ;;  %v1051_v14 = vsub.f32 %v130_v8, %v178_v34  ;;  %v1069_v43 = vld [vmem:[#allocation5 + $0x38] sm:$0xff]  ;;  %v1081_v36 = vmul.f32 %v210_v52, %v210_v52  ;;  %v1083_v6 = vmul.f32 %v211_v2, %v211_v2 }
  0x76   :  { %1531 = vst [vmem:[#allocation73_spill] sm:$0xff] %v1069_v43  ;;  %v1085_v26 = vmul.f32 %v212_v25, %v212_v25  ;;  %v1087_v49 = vmul.f32 %v213_v54, %v213_v54  ;;  %v1089_v22 = vmul.f32 %v214_v53, %v214_v53  ;;  %v1532_v51 = vld [vmem:[#allocation70_spill] sm:$0xff]  ;;  %v1533_v63 = vld [vmem:[#allocation69_spill] sm:$0xff]  ;;  %v1534_v3 = vld [vmem:[#allocation71_spill] sm:$0xff]  ;;  %v319_v21 = vmul.f32 0.5, %v1067_v46 }
  0x77   :  { %1530 = vst [vmem:[#allocation72_spill] sm:$0xff] %v1051_v14  ;;  %v267_v4 = vadd.f32 %v1532_v51, %v1007_v24  ;;  %v286_v5 = vadd.f32 %v1534_v3, %v1533_v63  ;;  %v320_v44 = vmul.f32 0.5, %v1069_v43  ;;  %v1535_v15 = vld [vmem:[#allocation63_spill] sm:$0xff]  ;;  %v1537_v11 = vld [vmem:[#allocation66_spill] sm:$0xff]  ;;  %v1539_v9 = vld [vmem:[#allocation65_spill] sm:$0xff]  ;;  %vm183_vm0 = vcmp.gt.f32.partialorder %v1045_v13, 0.5 }
  0x78   :  { %v1536_v56 = vld [vmem:[#allocation59_spill] sm:$0xff]  ;;  %v1538_v25 = vld [vmem:[#allocation62_spill] sm:$0xff]  ;;  %v1107_v48 = vsub.f32 %v1539_v9, %v319_v21  ;;  %v1540_v50 = vld [vmem:[#allocation68_spill] sm:$0xff]  ;;  %v1113_v18 = vadd.f32 %v319_v21, %v1539_v9  ;;  %vm184_vm1 = vcmp.gt.f32.partialorder %v1047_v23, 0.5 }
  0x79   :  { %v321_v2 = vsub.f32 %v1536_v56, %v1535_v15  ;;  %v322_v58 = vsub.f32 %v1538_v25, %v1537_v11  ;;  %v268_v54 = vadd.f32 %v267_v4, %v1021_v10  ;;  %v287_v29 = vadd.f32 %v286_v5, %v232_v59  ;;  %v1541_v53 = vld [vmem:[#allocation34_spill] sm:$0xff]  ;;  %v1542_v4 = vld [vmem:[#allocation35_spill] sm:$0xff]  ;;  %v1543_v3 = vld [vmem:[#allocation32_spill] sm:$0xff] }
  0x7a   :  { %v325_v52 = vadd.f32 %v1535_v15, %v1536_v56  ;;  %v326_v24 = vadd.f32 %v1537_v11, %v1538_v25  ;;  %v1110_v8 = vsub.f32 %v1540_v50, %v320_v44  ;;  %v1116_v34 = vadd.f32 %v320_v44, %v1540_v50  ;;  %v1544_v15 = vld [vmem:[#allocation33_spill] sm:$0xff]  ;;  %v1545_v11 = vld [vmem:[#allocation40_spill] sm:$0xff]  ;;  %v1546_v55 = vld [vmem:[#allocation42_spill] sm:$0xff] }
  0x7b   :  { %v269_v10 = vadd.f32 %v268_v54, %v233_v37  ;;  %v288_v59 = vadd.f32 %v287_v29, %v234_v31  ;;  %v347_v5 = vmax.f32 %v1543_v3, %v321_v2  ;;  %v348_v56 = vmax.f32 %v1544_v15, %v322_v58  ;;  %v1547_v37 = vld [vmem:[#allocation39_spill] sm:$0xff]  ;;  %v1548_v54 = vld [vmem:[#allocation41_spill] sm:$0xff] }
  0x7c   :  { %v345_v51 = vmin.f32 %v1541_v53, %v325_v52  ;;  %v346_v63 = vmin.f32 %v1542_v4, %v326_v24  ;;  %v353_v25 = vmin.f32 %v1545_v11, %v1113_v18  ;;  %v354_v21 = vmin.f32 %v1546_v55, %v1116_v34 }
  0x7d   :  { %v270_v44 = vadd.f32 %v269_v10, %v235_v7  ;;  %v289_v9 = vadd.f32 %v288_v59, %v236_v1  ;;  %v355_v31 = vmax.f32 %v1547_v37, %v1107_v48  ;;  %v356_v29 = vmax.f32 %v1548_v54, %v1110_v8  ;;  %v1549_v37 = vld [vmem:[#allocation45_spill] sm:$0xff] }
  0x7e   :  { %v349_v50 = vsub.f32 %v345_v51, %v347_v5  ;;  %v350_v53 = vsub.f32 %v346_v63, %v348_v56  ;;  %v369_v4 = vsub.f32 %v325_v52, %v321_v2  ;;  %v370_v3 = vsub.f32 %v326_v24, %v322_v58 }
  0x7f   :  { %v271_v15 = vadd.f32 %v270_v44, %v237_v57  ;;  %v290_v11 = vadd.f32 %v289_v9, %v238_v27  ;;  %v357_v28 = vsub.f32 %v353_v25, %v355_v31  ;;  %v358_v55 = vsub.f32 %v354_v21, %v356_v29  ;;  %v1550_v57 = vld [vmem:[#allocation49_spill] sm:$0xff]  ;;  %v1551_v31 = vld [vmem:[#allocation60_spill] sm:$0xff] }
  0x80   :  { %v351_v43 = vmax.f32 %v349_v50, 0.0  ;;  %v352_v14 = vmax.f32 %v350_v53, 0.0  ;;  %v371_v7 = vsub.f32 %v1113_v18, %v1107_v48  ;;  %v372_v1 = vsub.f32 %v1116_v34, %v1110_v8  ;;  %v1554_v53 = vld [vmem:[#allocation47_spill] sm:$0xff] }
  0x81   :  { %v272_v10 = vadd.f32 %v271_v15, %v239_v35  ;;  %v291_v59 = vadd.f32 %v290_v11, %v240_v39  ;;  %v359_v51 = vmax.f32 %v357_v28, 0.0  ;;  %v360_v63 = vmax.f32 %v358_v55, 0.0  ;;  %v1552_v35 = vld [vmem:[#allocation61_spill] sm:$0xff]  ;;  %v1553_v28 = vld [vmem:[#allocation43_spill] sm:$0xff] }
  0x82   :  { %v373_v5 = vmul.f32 %v371_v7, %v369_v4  ;;  %v374_v56 = vmul.f32 %v372_v1, %v370_v3  ;;  %v401_v54 = vmin.f32 %v1549_v37, %v325_v52  ;;  %v402_v27 = vmin.f32 %v1550_v57, %v326_v24  ;;  %v1559_v37 = vld [vmem:[#allocation64_spill] sm:$0xff] }
  0x83   :  { %v273_v25 = vadd.f32 %v272_v10, %v1059_v16  ;;  %v292_v21 = vadd.f32 %v291_v59, %v1061_v40  ;;  %v1140_v44 = vmul.f32 %v359_v51, %v351_v43  ;;  %v1142_v9 = vmul.f32 %v360_v63, %v352_v14  ;;  %v1555_v16 = vld [vmem:[#allocation46_spill] sm:$0xff] }
  0x84   :  { %v375_v29 = vadd.f32 %v373_v5, %v1551_v31  ;;  %v376_v39 = vadd.f32 %v374_v56, %v1552_v35  ;;  %v403_v50 = vmax.f32 %v1553_v28, %v321_v2  ;;  %v404_v4 = vmax.f32 %v1554_v53, %v322_v58  ;;  %v1556_v40 = vld [vmem:[#allocation50_spill] sm:$0xff]  ;;  %v1562_v31 = vld [vmem:[#allocation56_spill] sm:$0xff] }
  0x85   :  { %v274_v52 = vadd.f32 %v273_v25, %v1063_v41  ;;  %v293_v24 = vadd.f32 %v292_v21, %v1065_v42  ;;  %v409_v3 = vmin.f32 %v1555_v16, %v1113_v18  ;;  %v410_v43 = vmin.f32 %v1556_v40, %v1116_v34  ;;  %v1557_v41 = vld [vmem:[#allocation44_spill] sm:$0xff]  ;;  %v1561_v25 = vld [vmem:[#allocation67_spill] sm:$0xff]  ;;  %v1564_v40 = vld [vmem:[#allocation57_spill] sm:$0xff] }
  0x86   :  { %v377_v14 = vsub.f32 %v375_v29, %v1140_v44  ;;  %v378_v15 = vsub.f32 %v376_v39, %v1142_v9  ;;  %v405_v11 = vsub.f32 %v401_v54, %v403_v50  ;;  %v406_v55 = vsub.f32 %v402_v27, %v404_v4  ;;  %v1558_v42 = vld [vmem:[#allocation48_spill] sm:$0xff]  ;;  %v1560_v27 = vld [vmem:[#allocation54_spill] sm:$0xff] }
  0x87   :  { %v275_v2 = vadd.f32 %v274_v52, %v1071_v0  ;;  %v294_v58 = vadd.f32 %v293_v24, %v1073_v60  ;;  %v411_v7 = vmax.f32 %v1557_v41, %v1107_v48  ;;  %v412_v1 = vmax.f32 %v1558_v42, %v1110_v8  ;;  %v179_v52 = vld [vmem:[#allocation7 + $0x130] sm:$0xff]  ;;  %v1567_v42 = vld [vmem:[#allocation72_spill] sm:$0xff] }
  0x88   :  { %v255_v18 = vmul.f32 %v1023_v19, %v1023_v19  ;;  %v256_v34 = vmul.f32 %v1025_v12, %v1025_v12  ;;  %v257_v10 = vmul.f32 %v1029_v17, %v1029_v17  ;;  %v379_v0 = vsel %vm183_vm0, %v377_v14, 1.0  ;;  %v1566_v14 = vld [vmem:[#allocation58_spill] sm:$0xff] }
  0x89   :  { %v276_v60 = vadd.f32 %v275_v2, %v1075_v45  ;;  %v295_v59 = vadd.f32 %v294_v58, %v1077_v47  ;;  %v407_v48 = vmax.f32 %v405_v11, 0.0  ;;  %v413_v51 = vsub.f32 %v409_v3, %v411_v7 }
  0x8a   :  { %v380_v8 = vsel %vm184_vm1, %v378_v15, 1.0  ;;  %v408_v63 = vmax.f32 %v406_v55, 0.0  ;;  %v414_v19 = vsub.f32 %v410_v43, %v412_v1  ;;  %v425_v54 = vadd.f32 %v1559_v37, %v373_v5 }
  0x8b   :  { %v277_v12 = vadd.f32 %v276_v60, %v1079_v32  ;;  %v296_v17 = vadd.f32 %v295_v59, %v1081_v36  ;;  %v415_v57 = vmax.f32 %v413_v51, 0.0  ;;  %v1180_v45 = vsel %vm183_vm0, %v1560_v27, 1.0 }
  0x8c   :  { %601 = vrcp.f32 %v379_v0  ;;  %v416_v47 = vmax.f32 %v414_v19, 0.0  ;;  %v426_v21 = vadd.f32 %v1561_v25, %v374_v56  ;;  %v1186_v29 = vsel %vm184_vm1, %v1562_v31, 1.0  ;;  %v1568_v0 = vld [vmem:[#allocation73_spill] sm:$0xff] }
  0x8d   :  { %v278_v5 = vadd.f32 %v277_v12, %v1083_v6  ;;  %v297_v32 = vadd.f32 %v296_v17, %v1085_v26  ;;  %603 = vrcp.f32 %v380_v8  ;;  %v1190_v36 = vmul.f32 %v415_v57, %v407_v48  ;;  %v131_v26 = vld [vmem:[#allocation2 + $0x1d0] sm:$0xff] }
  0x8e   :  { %v258_v35 = vmul.f32 %v1031_v61, %v1031_v61  ;;  %v259_v39 = vmul.f32 %v1033_v62, %v1033_v62  ;;  %v418_v28 = vmul.f32 %v416_v47, %v408_v63  ;;  %605 = vrsqrt.f32 %v1180_v45 }
  0x8f   :  { %v279_v56 = vadd.f32 %v278_v5, %v1087_v49  ;;  %v298_v50 = vadd.f32 %v297_v32, %v1089_v22  ;;  %v427_v6 = vsub.f32 %v425_v54, %v1190_v36  ;;  %607 = vrsqrt.f32 %v1186_v29  ;;  %v132_v49 = vld [vmem:[#allocation2 + $0x1d8] sm:$0xff] }
  0x90   :  { %v260_v53 = vmul.f32 %v1037_v38, %v1037_v38  ;;  %v261_v61 = vmul.f32 %v1039_v20, %v1039_v20  ;;  %v428_v4 = vsub.f32 %v426_v21, %v418_v28  ;;  %v1208_v62 = vsel %vm183_vm0, %v1067_v46, 1.0  ;;  %v180_v22 = vld [vmem:[#allocation7 + $0x138] sm:$0xff] }
  0x91   :  { %v280_v24 = vadd.f32 %v279_v56, %v255_v18  ;;  %v299_v16 = vadd.f32 %v298_v50, %v256_v34  ;;  %v429_v3 = vsel %vm183_vm0, %v427_v6, 1.0  ;;  %609 = vrsqrt.f32 %v1208_v62  ;;  %v1596_v6 = vld [vmem:[#allocation55_spill] sm:$0xff] }
  0x92   :  { %v1563_v38 = vsub.f32 1.0, %v1045_v13  ;;  %v1565_v43 = vsub.f32 1.0, %v1047_v23  ;;  %v430_v46 = vsel %vm184_vm1, %v428_v4, 1.0  ;;  %611 = vrcp.f32 %v429_v3 }
  0x93   :  { %v262_v11 = vmul.f32 %v1041_v30, %v1041_v30  ;;  %v281_v55 = vadd.f32 %v280_v24, %v257_v10  ;;  %v300_v2 = vadd.f32 %v299_v16, %v258_v35  ;;  %613 = vrcp.f32 %v430_v46 }
  0x94   :  { %v311_v20 = vmul.f32 %v1564_v40, %v1563_v38  ;;  %v312_v15 = vmul.f32 %v1566_v14, %v1565_v43  ;;  %v225_v58 = vsub.f32 %v131_v26, %v179_v52  ;;  %v226_v41 = vsub.f32 %v132_v49, %v180_v22  ;;  %v1573_v49 = vld [vmem:[#allocation24_spill] sm:$0xff]  ;;  %v1574_v52 = vld [vmem:[#allocation17_spill] sm:$0xff]  ;;  %v1575_v38 = vld [vmem:[#allocation30_spill] sm:$0xff] }
  0x95   :  { %v263_v7 = vmul.f32 %v1049_v33, %v1049_v33  ;;  %v264_v1 = vmul.f32 %v1567_v42, %v1567_v42  ;;  %v282_v18 = vadd.f32 %v281_v55, %v259_v39  ;;  %v301_v34 = vadd.f32 %v300_v2, %v260_v53  ;;  %v1576_v40 = vld [vmem:[#allocation18_spill] sm:$0xff]  ;;  %v1577_v43 = vld [vmem:[#allocation28_spill] sm:$0xff] }
  0x96   :  { %v1230_v60 = vsel %vm184_vm1, %v1568_v0, 1.0  ;;  %v602_v59 = vpop.eup %601  ;;  %v549_v30 = vadd.f32 %v312_v15, %v311_v20  ;;  %v265_v19 = vmul.f32 %v225_v58, %v225_v58  ;;  %v266_v37 = vmul.f32 %v226_v41, %v226_v41  ;;  %v1578_v14 = vld [vmem:[#allocation20_spill] sm:$0xff]  ;;  %v1579_v41 = vld [vmem:[#allocation31_spill] sm:$0xff] }
  0x97   :  { %v604_v10 = vpop.eup %603  ;;  %v283_v48 = vadd.f32 %v282_v18, %v261_v61  ;;  %v302_v51 = vadd.f32 %v301_v34, %v262_v11  ;;  %615 = vrsqrt.f32 %v1230_v60  ;;  %vm473_vm2 = vcmp.eq.f32.partialorder %v1180_v45, inf  ;;  %v1582_v18 = vld [vmem:[#allocation15_spill] sm:$0xff] }
  0x98   :  { %v606_v8 = vpop.eup %605  ;;  %v550_v63 = vrot.slane %v549_v30, 4  ;;  %v1235_v57 = vmul.f32 %v602_v59, %v1140_v44  ;;  %vm475_vm3 = vcmp.eq.f32.partialorder %v1180_v45, 0.0  ;;  %vm480_vm4 = vcmp.eq.f32.partialorder %v1186_v29, inf }
  0x99   :  { %v608_v33 = vpop.eup %607  ;;  %v284_v54 = vadd.f32 %v283_v48, %v263_v7  ;;  %v303_v12 = vadd.f32 %v302_v51, %v264_v1  ;;  %v1240_v25 = vmul.f32 %v604_v10, %v1142_v9  ;;  %v472_v21 = vmul.f32 %v606_v8, %v1180_v45  ;;  %v1580_v7 = vld [vmem:[#allocation22_spill] sm:$0xff]  ;;  %v1584_v10 = vld [vmem:[#allocation16_spill] sm:$0xff]  ;;  %v1585_v51 = vld [vmem:[#allocation27_spill] sm:$0xff] }
  0x9a   :  { %v551_v27 = vadd.f32 %v550_v63, %v549_v30  ;;  %v479_v31 = vmul.f32 %v608_v33, %v1186_v29  ;;  %vm507_vm5 = vcmp.eq.f32.partialorder %v1208_v62, inf  ;;  %v476_v50 = vand.u32 2147483648, %v1180_v45  ;;  %v1583_v30 = vld [vmem:[#allocation26_spill] sm:$0xff]  ;;  %v1586_v8 = vld [vmem:[#allocation19_spill] sm:$0xff]  ;;  %v1587_v33 = vld [vmem:[#allocation29_spill] sm:$0xff] }
  0x9b   :  { %v610_v17 = vpop.eup %609  ;;  %v285_v35 = vadd.f32 %v284_v54, %v265_v19  ;;  %v304_v39 = vadd.f32 %v303_v12, %v266_v37  ;;  %vm482_vm6 = vcmp.eq.f32.partialorder %v1186_v29, 0.0  ;;  %v483_v9 = vand.u32 2147483648, %v1186_v29  ;;  %v1588_v19 = vld [vmem:[#allocation21_spill] sm:$0xff] }
  0x9c   :  { %v612_v47 = vpop.eup %611  ;;  %v506_v5 = vmul.f32 %v610_v17, %v1208_v62  ;;  %vm509_vm8 = vcmp.eq.f32.partialorder %v1208_v62, 0.0  ;;  %v510_v26 = vand.u32 2147483648, %v1208_v62  ;;  %v552_v53 = vrot.slane %v551_v27, 2  ;;  %v1589_v12 = vld [vmem:[#allocation37_spill] sm:$0xff] }
  0x9d   :  { %v614_v32 = vpop.eup %613  ;;  %v432_v44 = vmul.f32 %v612_v47, %v1190_v36  ;;  %v481_v61 = vsel %vm480_vm4, %v1186_v29, %v479_v31  ;;  %v539_v24 = vmul.f32 %v285_v35, %v1045_v13  ;;  %v540_v16 = vmul.f32 %v304_v39, %v1047_v23  ;;  %v1590_v17 = vld [vmem:[#allocation25_spill] sm:$0xff]  ;;  %v1591_v31 = vld [vmem:[#allocation38_spill] sm:$0xff]  ;;  %v1594_v39 = vld [vmem:[#allocation52_spill] sm:$0xff] }
  0x9e   :  { %v434_v56 = vmul.f32 %v614_v32, %v418_v28  ;;  %v474_v28 = vsel %vm473_vm2, %v1180_v45, %v472_v21  ;;  %v508_v4 = vsel %vm507_vm5, %v1208_v62, %v506_v5  ;;  %vm514_vm10 = vcmp.eq.f32.partialorder %v1230_v60, inf  ;;  %v1581_v62 = vld [vmem:[#allocation23_spill] sm:$0xff]  ;;  %v1592_v5 = vld [vmem:[#allocation36_spill] sm:$0xff] }
  0x9f   :  { %vm1251_vm7 = vcmp.gt.f32.partialorder %v1235_v57, %v432_v44  ;;  %v517_v46 = vand.u32 2147483648, %v1230_v60  ;;  %v1287_v11 = vsel %vm475_vm3, %v476_v50, %v474_v28  ;;  %v1291_v55 = vsel %vm482_vm6, %v483_v9, %v481_v61  ;;  %v1593_v32 = vld [vmem:[#allocation51_spill] sm:$0xff]  ;;  %v1595_v50 = vld [vmem:[#allocation53_spill] sm:$0xff] }
  0xa0   :  { %vm1258_vm9 = vcmp.gt.f32.partialorder %v1240_v25, %v434_v56  ;;  %v443_v22 = vsel %vm1251_vm7, %v1574_v52, %v1573_v49  ;;  %v445_v15 = vsel %vm1251_vm7, %v1578_v14, %v1577_v43  ;;  %v1295_v2 = vsel %vm509_vm8, %v510_v26, %v508_v4 }
  0xa1   :  { %v616_v3 = vpop.eup %615  ;;  %v444_v20 = vsel %vm1258_vm9, %v1576_v40, %v1575_v38  ;;  %v553_v58 = vadd.f32 %v552_v53, %v551_v27  ;;  %v446_v42 = vsel %vm1258_vm9, %v1580_v7, %v1579_v41  ;;  %v1303_v1 = vsel %vm183_vm0, %v443_v22, 1.0 }
  0xa2   :  { %v1307_v45 = vsel %vm184_vm1, %v444_v20, 1.0  ;;  %v1311_v29 = vsel %vm183_vm0, %v445_v15, 1.0  ;;  %v439_v34 = vsel %vm1251_vm7, %v1582_v18, %v1581_v62  ;;  %617 = vrsqrt.f32 %v1303_v1 }
  0xa3   :  { %v513_v0 = vmul.f32 %v616_v3, %v1230_v60  ;;  %v541_v59 = vadd.f32 %v540_v16, %v539_v24  ;;  %v440_v48 = vsel %vm1258_vm9, %v1584_v10, %v1583_v30  ;;  %v441_v63 = vsel %vm1251_vm7, %v1586_v8, %v1585_v51 }
  0xa4   :  { %v442_v37 = vsel %vm1258_vm9, %v1588_v19, %v1587_v33  ;;  %619 = vrsqrt.f32 %v1307_v45  ;;  %vm516_vm11 = vcmp.eq.f32.partialorder %v1230_v60, 0.0  ;;  %v437_v54 = vsel %vm1251_vm7, %v1235_v57, %v432_v44 }
  0xa5   :  { %v447_v27 = vsel %vm1251_vm7, %v1590_v17, %v1589_v12  ;;  %v1342_v47 = vsel %vm184_vm1, %v446_v42, 1.0  ;;  %621 = vrsqrt.f32 %v1311_v29  ;;  %v438_v21 = vsel %vm1258_vm9, %v1240_v25, %v434_v56 }
  0xa6   :  { %v448_v57 = vsel %vm1258_vm9, %v1592_v5, %v1591_v31  ;;  %v449_v35 = vsub.f32 %v439_v34, %v1593_v32  ;;  %623 = vrsqrt.f32 %v1342_v47  ;;  %v450_v44 = vsub.f32 %v440_v48, %v1594_v39 }
  0xa7   :  { %v451_v9 = vsub.f32 %v441_v63, %v1595_v50  ;;  %v452_v26 = vsub.f32 %v442_v37, %v1596_v6  ;;  %vm457_vm12 = vcmp.eq.f32.partialorder %v1303_v1, inf  ;;  %vm459_vm13 = vcmp.eq.f32.partialorder %v1303_v1, 0.0 }
  0xa8   :  { %v460_v25 = vand.u32 2147483648, %v1303_v1  ;;  %vm464_vm14 = vcmp.eq.f32.partialorder %v1307_v45, inf  ;;  %v535_v56 = vsub.f32 %v447_v27, %v437_v54  ;;  %vm466_vm15 = vcmp.eq.f32.partialorder %v1307_v45, 0.0 }
  0xa9   :  { %v536_v53 = vsub.f32 %v448_v57, %v438_v21  ;;  %v542_v36 = vrot.slane %v541_v59, 4  ;;  %v554_v28 = vrot.slane %v553_v58, 1  ;;  %v467_v61 = vand.u32 2147483648, %v1307_v45 }
  0xaa   :  { %vm491_vm0 = vcmp.eq.f32.partialorder %v1311_v29, inf  ;;  %v515_v4 = vsel %vm514_vm10, %v1230_v60, %v513_v0  ;;  %v537_v49 = vmul.f32 %v535_v56, %v535_v56  ;;  %v521_v52 = vmul.f32 %v449_v35, %v449_v35 }
  0xab   :  { %v538_v22 = vmul.f32 %v536_v53, %v536_v53  ;;  %v543_v24 = vadd.f32 %v542_v36, %v541_v59  ;;  %v555_v16 = vadd.f32 %v554_v28, %v553_v58  ;;  %v522_v3 = vmul.f32 %v450_v44, %v450_v44 }
  0xac   :  { %v523_v38 = vmul.f32 %v451_v9, %v451_v9  ;;  %v524_v40 = vmul.f32 %v452_v26, %v452_v26  ;;  %v567_v20 = vmul.f32 %v537_v49, %v1045_v13  ;;  %v618_v43 = vpop.eup %617  ;;  %vm493_vm1 = vcmp.eq.f32.partialorder %v1311_v29, 0.0 }
  0xad   :  { %v494_v14 = vand.u32 2147483648, %v1311_v29  ;;  %v544_v15 = vrot.slane %v543_v24, 2  ;;  %556 = vst [vmem:[#allocation10 + $0x1] sm:$0x1] %v555_v16  ;;  %v568_v41 = vmul.f32 %v538_v22, %v1047_v23  ;;  %v456_v42 = vmul.f32 %v618_v43, %v1303_v1 }
  0xae   :  { %v620_v7 = vpop.eup %619  ;;  %vm498_vm2 = vcmp.eq.f32.partialorder %v1342_v47, inf  ;;  %vm500_vm3 = vcmp.eq.f32.partialorder %v1342_v47, 0.0  ;;  %v501_v58 = vand.u32 2147483648, %v1342_v47  ;;  %v518_v34 = vsel %vm516_vm11, %v517_v46, %v515_v4 }
  0xaf   :  { %v622_v62 = vpop.eup %621  ;;  %v463_v18 = vmul.f32 %v620_v7, %v1307_v45  ;;  %v545_v0 = vadd.f32 %v544_v15, %v543_v24  ;;  %v569_v59 = vadd.f32 %v568_v41, %v567_v20  ;;  %v458_v10 = vsel %vm457_vm12, %v1303_v1, %v456_v42 }
  0xb0   :  { %v624_v30 = vpop.eup %623  ;;  %v490_v48 = vmul.f32 %v622_v62, %v1311_v29  ;;  %v525_v51 = vadd.f32 %v523_v38, %v521_v52  ;;  %v526_v8 = vadd.f32 %v524_v40, %v522_v3  ;;  %v461_v63 = vsel %vm459_vm13, %v460_v25, %v458_v10 }
  0xb1   :  { %v465_v33 = vsel %vm464_vm14, %v1307_v45, %v463_v18  ;;  %v497_v60 = vmul.f32 %v624_v30, %v1342_v47  ;;  %v546_v46 = vrot.slane %v545_v0, 1  ;;  %v485_v37 = vsub.f32 %v461_v63, %v1287_v11 }
  0xb2   :  { %v468_v19 = vsel %vm466_vm15, %v467_v61, %v465_v33  ;;  %v492_v54 = vsel %vm491_vm0, %v1311_v29, %v490_v48  ;;  %v570_v12 = vrot.slane %v569_v59, 4 }
  0xb3   :  { %v486_v1 = vsub.f32 %v468_v19, %v1291_v55  ;;  %v495_v17 = vsel %vm493_vm1, %v494_v14, %v492_v54  ;;  %v499_v27 = vsel %vm498_vm2, %v1342_v47, %v497_v60  ;;  %v547_v21 = vadd.f32 %v546_v46, %v545_v0 }
  0xb4   :  { %v502_v45 = vsel %vm500_vm3, %v501_v58, %v499_v27  ;;  %v519_v11 = vsub.f32 %v495_v17, %v1295_v2  ;;  %v527_v31 = vmul.f32 %v485_v37, %v485_v37  ;;  %v571_v5 = vadd.f32 %v570_v12, %v569_v59 }
  0xb5   :  { %v520_v57 = vsub.f32 %v502_v45, %v518_v34  ;;  %v528_v32 = vmul.f32 %v486_v1, %v486_v1  ;;  %548 = vst [vmem:[#allocation10] sm:$0x1] %v547_v21 }
  0xb6   :  { %v529_v35 = vadd.f32 %v527_v31, %v525_v51  ;;  %v531_v55 = vmul.f32 %v519_v11, %v519_v11  ;;  %v572_v39 = vrot.slane %v571_v5, 2 }
  0xb7   :  { %v530_v29 = vadd.f32 %v528_v32, %v526_v8  ;;  %v532_v44 = vmul.f32 %v520_v57, %v520_v57 }
  0xb8   :  { %v533_v50 = vadd.f32 %v531_v55, %v529_v35  ;;  %v573_v9 = vadd.f32 %v572_v39, %v571_v5 }
  0xb9   :  { %v534_v6 = vadd.f32 %v532_v44, %v530_v29 }
  0xba   :  { %v557_v26 = vmul.f32 %v533_v50, %v1045_v13  ;;  %v574_v25 = vrot.slane %v573_v9, 1 }
  0xbb   :  { %v558_v47 = vmul.f32 %v534_v6, %v1047_v23 }
  0xbc   :  { %v575_v56 = vadd.f32 %v574_v25, %v573_v9 }
  0xbd   :  { %v559_v2 = vadd.f32 %v558_v47, %v557_v26 }
  0xbe   :  { %576 = vst [vmem:[#allocation10 + $0x3] sm:$0x1] %v575_v56 }
  0xbf   :  { %v560_v53 = vrot.slane %v559_v2, 4 }
  0xc1   :  { %v561_v36 = vadd.f32 %v560_v53, %v559_v2 }
  0xc3   :  { %v562_v28 = vrot.slane %v561_v36, 2 }
  0xc5   :  { %v563_v61 = vadd.f32 %v562_v28, %v561_v36 }
  0xc7   :  { %v564_v4 = vrot.slane %v563_v61, 1 }
  0xc9   :  { %v565_v49 = vadd.f32 %v564_v4, %v563_v61 }
  0xcb   :  { %566 = vst [vmem:[#allocation10 + $0x2] sm:$0x1] %v565_v49 }
  0xcc   :  { %724 = shalt.err (!%p721_p8)
}
  0xcd   :  { %s725_s13 = scalar_lea.hbm %s1423_s4, 64 }
  0xce   :  { %p726_p9 = scmp.ne.s32.totalorder %s1423_s4, %s725_s13  ;;  %p729_p10 = scmp.lt.u32.totalorder %s725_s13, %s1423_s4 }
  0xd0   :  { %p731_p11 = pnand %p729_p10, %p726_p9 }
  0xd2   :  { %734 = shalt.err (!%p731_p11)
}
  0xd3   :  { %586 = dma.vmem_to_hbm [thread:$0]  %s584_s27, 64, %s1423_s4, [#allocation4]  }
  0xd4   :  { %741 = dma.done.wait [#allocation4], 64  }
  0xd5   :  { %742 = vsyncadd [#allocation4], 4294967232 }
  0xd6   :  { %590 = vsyncpa [#allocation3], 1 }
  0xd7   :  { %591 = vsyncpa [#allocation6], 1 }
  0xd8   :  { %592 = vsyncpa [#allocation9], 1 }
  0xd9   :  { %593 = vsyncpa [#allocation4], 1 }

</bundles_post_ra>
